<compile_context>
chip_gen: v7x
topology: tpu7x:2x2x1
jax: 0.10.0
libtpu: 0.0.40
codegen_flags: <defaults>
</compile_context>

<pallas_src>
import functools
import math

import jax
import jax.numpy as jnp
import numpy as np
from jax.experimental import pallas as pl
from jax.experimental.pallas import tpu as pltpu

LEAKY_SLOPE = 0.1
BN_EPS = 1e-5


def _round_up(x, m):
    return (x + m - 1) // m * m


# ------------------------------ Pallas kernel -------------------------------

def _fused_forward_kernel(a0_ref,
                          sel1_ref, band1_ref, bias1_ref,
                          sel2_ref, band2_ref, bias2_ref,
                          sel3_ref, band3_ref, bias3_ref,
                          rowpool_ref, colpool_ref,
                          w1_ref, c1_ref, w2_ref, c2_ref,
                          o_ref, *, alpha):
    """conv1 -> conv2 -> conv3 -> avgpool -> linear -> leaky -> linear."""

    def leaky(y):
        return jnp.where(y >= 0.0, y, alpha * y)

    def conv_stage(act, sel_ref, band_ref, bias_ref):
        # act: (N*H_in, W_in*C_in) bf16 -> (N*H_out, W_out*C_out) bf16.
        kh = sel_ref.shape[0]
        acc = jnp.zeros((sel_ref.shape[1], band_ref.shape[2]), jnp.float32)
        for i in range(kh):                                 # static unroll
            rows = jnp.dot(sel_ref[i], act,
                           preferred_element_type=jnp.float32)
            acc = acc + jnp.dot(rows.astype(jnp.bfloat16), band_ref[i],
                                preferred_element_type=jnp.float32)
        return leaky(acc + bias_ref[...]).astype(jnp.bfloat16)

    a1 = conv_stage(a0_ref[...], sel1_ref, band1_ref, bias1_ref)
    a2 = conv_stage(a1, sel2_ref, band2_ref, bias2_ref)
    a3 = conv_stage(a2, sel3_ref, band3_ref, bias3_ref)

    # AdaptiveAvgPool2d(1): sum rows per image, then sum the W channel groups
    # (the 1/(H*W) factor is folded into colpool).
    pooled = jnp.dot(
        jnp.dot(rowpool_ref[...], a3,
                preferred_element_type=jnp.float32).astype(jnp.bfloat16),
        colpool_ref[...], preferred_element_type=jnp.float32)

    # Linear (+BN1d eval folded) -> LeakyReLU -> Linear.
    y1 = leaky(jnp.dot(pooled.astype(jnp.bfloat16), w1_ref[...],
                       preferred_element_type=jnp.float32) + c1_ref[...])
    y2 = jnp.dot(y1.astype(jnp.bfloat16), w2_ref[...],
                 preferred_element_type=jnp.float32) + c2_ref[...]
    o_ref[...] = y2.astype(o_ref.dtype)


def fused_forward(a0, prep):
    n_imgs = prep["rowpool"].shape[0]
    n_cols = prep["lin2_w"].shape[1]
    args = (a0,
            prep["sel1"], prep["band1"], prep["bias1"],
            prep["sel2"], prep["band2"], prep["bias2"],
            prep["sel3"], prep["band3"], prep["bias3"],
            prep["rowpool"], prep["colpool"],
            prep["lin1_w"], prep["lin1_b"], prep["lin2_w"], prep["lin2_b"])
    kern = functools.partial(_fused_forward_kernel, alpha=LEAKY_SLOPE)
    return pl.pallas_call(
        kern,
        out_shape=jax.ShapeDtypeStruct((n_imgs, n_cols), jnp.float32),
        in_specs=[pl.BlockSpec(memory_space=pltpu.MemorySpace.VMEM)] * len(args),
        out_specs=pl.BlockSpec(memory_space=pltpu.MemorySpace.VMEM),
    )(*args)


# ----------------------- One-time parameter compilation ---------------------

def _bn_fold(bn):
    scale = np.asarray(bn["gamma"]) / np.sqrt(np.asarray(bn["var"]) + BN_EPS)
    bias = np.asarray(bn["beta"]) - np.asarray(bn["mean"]) * scale
    return scale, bias


def _build_row_select(n_imgs, h_in, h_out, kh, stride, pad):
    sel = np.zeros((kh, n_imgs * h_out, n_imgs * h_in), np.float32)
    for i in range(kh):
        for n in range(n_imgs):
            for ho in range(h_out):
                h = stride * ho + i - pad
                if 0 <= h < h_in:
                    sel[i, n * h_out + ho, n * h_in + h] = 1.0
    return sel


def _build_banded_weight(w_oihw, scale, w_in, stride, pad):
    """(Cout,Cin,kh,kw) conv weight -> (kh, W_in*Cin, W_out*Cout) banded mats
    with the kw taps, W-stride/padding and BN scale folded in."""
    w_oihw = np.asarray(w_oihw)
    c_out, c_in, kh, kw = w_oihw.shape
    w_out = (w_in + 2 * pad - kw) // stride + 1
    w_hwio = w_oihw.transpose(2, 3, 1, 0)                   # (kh, kw, Cin, Cout)
    band = np.zeros((kh, w_in * c_in, w_out * c_out), np.float32)
    for i in range(kh):
        for wo in range(w_out):
            for j in range(kw):
                w = stride * wo + j - pad
                if 0 <= w < w_in:
                    band[i, w * c_in:(w + 1) * c_in,
                         wo * c_out:(wo + 1) * c_out] = w_hwio[i, j] * scale[None, :]
    return band, w_out


def prepare_params(params, *, n_imgs, height, width, num_classes):
    """One-time: fold BN, build Sel/Band/pool matrices, cast to bf16."""
    dims = params["lin1_w"].shape[0]
    prep = {}
    h, w = height, width
    convs = [("conv1_w", "bn1", 2, 3), ("conv2_w", "bn2", 2, 2),
             ("conv3_w", "bn3", 1, 1)]
    for idx, (wname, bnname, stride, pad) in enumerate(convs, start=1):
        scale, bias = _bn_fold(params[bnname])
        kh = params[wname].shape[2]
        band, w_out = _build_banded_weight(params[wname], scale, w, stride, pad)
        h_out = (h + 2 * pad - kh) // stride + 1
        sel = _build_row_select(n_imgs, h, h_out, kh, stride, pad)
        prep[f"sel{idx}"] = jnp.asarray(sel, jnp.bfloat16)
        prep[f"band{idx}"] = jnp.asarray(band, jnp.bfloat16)
        prep[f"bias{idx}"] = jnp.asarray(np.tile(bias, w_out)[None, :], jnp.float32)
        h, w = h_out, w_out

    # AdaptiveAvgPool2d(1) as row/column selection matmuls.
    rowpool = np.zeros((n_imgs, n_imgs * h), np.float32)
    for n in range(n_imgs):
        rowpool[n, n * h:(n + 1) * h] = 1.0
    colpool = np.zeros((w * dims, dims), np.float32)
    for ww in range(w):
        colpool[ww * dims:(ww + 1) * dims, :] = np.eye(dims, dtype=np.float32)
    colpool /= float(h * w)
    prep["rowpool"] = jnp.asarray(rowpool, jnp.bfloat16)
    prep["colpool"] = jnp.asarray(colpool, jnp.bfloat16)

    # Linear1 (+BN1d eval fold), Linear2 padded to a lane-dense 128 columns.
    s1, b1 = _bn_fold(params["bn1d"])
    w1 = np.asarray(params["lin1_w"]).T * s1[None, :]
    c1 = np.asarray(params["lin1_b"]) * s1 + b1
    n_pad = _round_up(num_classes, 128)
    w2 = np.zeros((dims, n_pad), np.float32)
    w2[:, :num_classes] = np.asarray(params["lin2_w"]).T
    c2 = np.zeros((n_pad,), np.float32)
    c2[:num_classes] = np.asarray(params["lin2_b"])
    prep["lin1_w"] = jnp.asarray(w1, jnp.bfloat16)
    prep["lin1_b"] = jnp.asarray(c1[None, :], jnp.float32)
    prep["lin2_w"] = jnp.asarray(w2, jnp.bfloat16)
    prep["lin2_b"] = jnp.asarray(c2[None, :], jnp.float32)
    return prep


# -------------------------------- Forward -----------------------------------

@functools.partial(jax.jit, static_argnames=("T", "num_classes"))
def forward(prep, x, *, T, num_classes):
    B, C, D = x.shape
    H = math.isqrt(D)
    assert H * H == D, "input spatial dim must be a perfect square"
    N = B // T
    # x.view(-1, T, C, H, H).mean(1) + layout prep of the tiny input is left
    # to XLA (a Pallas launch here would be pure per-call overhead).
    xm = jnp.mean(x.reshape(N, T, C, H, H), axis=1)           # (N, C, H, W)
    a0 = xm.transpose(0, 2, 3, 1).reshape(N * H, H * C)       # (N*H, W*Cin)
    out = fused_forward(a0.astype(jnp.bfloat16), prep)        # (N, 128)
    return out[:, :num_classes]


# --------------------------- Parameter init (spec) ---------------------------

def init_params(key, in_dims, dims, num_classes):
    ks = jax.random.split(key, 5)

    def kaiming_out(k, shape, fan_out):
        std = (2.0 / fan_out) ** 0.5
        return std * jax.random.normal(k, shape, jnp.float32)

    p = {
        "conv1_w": kaiming_out(ks[0], (dims, in_dims, 7, 7), dims * 7 * 7),
        "conv2_w": kaiming_out(ks[1], (dims, dims, 5, 5), dims * 5 * 5),
        "conv3_w": kaiming_out(ks[2], (dims, dims, 3, 3), dims * 3 * 3),
        "lin1_w": kaiming_out(ks[3], (dims, dims), dims),
        "lin1_b": jnp.zeros((dims,), jnp.float32),
        "lin2_w": kaiming_out(ks[4], (num_classes, dims), num_classes),
        "lin2_b": jnp.zeros((num_classes,), jnp.float32),
    }
    for name, n in [("bn1", dims), ("bn2", dims), ("bn3", dims), ("bn1d", dims)]:
        p[name] = dict(gamma=jnp.ones((n,), jnp.float32),
                       beta=jnp.zeros((n,), jnp.float32),
                       mean=jnp.zeros((n,), jnp.float32),
                       var=jnp.ones((n,), jnp.float32))
    return p


if __name__ == "__main__":
    # Small shapes consistent with the module's forward:
    #   x: (B, C, D) with D = H*H, B divisible by T
    in_dims, dims, num_classes, T = 4, 32, 10, 2
    num_patches, num_head, num_layer = 16, 4, 1   # unused in forward
    B, H = 4, 16
    D = H * H

    key = jax.random.PRNGKey(0)
    kx, kp = jax.random.split(key)
    x = jax.random.normal(kx, (B, in_dims, D), jnp.float32)
    params = init_params(kp, in_dims, dims, num_classes)

    prep = prepare_params(params, n_imgs=B // T, height=H, width=H,
                          num_classes=num_classes)           # one-time
    out = forward(prep, x, T=T, num_classes=num_classes)
    out = jax.block_until_ready(out)
    assert out.shape == (B // T, num_classes), out.shape
    assert out.dtype == jnp.float32
    print("KERNEL_OK")
</pallas_src>

<mosaic_0001>
module attributes {stable_mosaic.version = 11 : i64} {
  func.func @_fused_forward_kernel(%arg0: memref<32x64xbf16, #tpu.memory_space<vmem>>, %arg1: memref<7x16x32xbf16, #tpu.memory_space<vmem>>, %arg2: memref<7x64x256xbf16, #tpu.memory_space<vmem>>, %arg3: memref<1x256xf32, #tpu.memory_space<vmem>>, %arg4: memref<5x8x16xbf16, #tpu.memory_space<vmem>>, %arg5: memref<5x256x128xbf16, #tpu.memory_space<vmem>>, %arg6: memref<1x128xf32, #tpu.memory_space<vmem>>, %arg7: memref<3x8x8xbf16, #tpu.memory_space<vmem>>, %arg8: memref<3x128x128xbf16, #tpu.memory_space<vmem>>, %arg9: memref<1x128xf32, #tpu.memory_space<vmem>>, %arg10: memref<2x8xbf16, #tpu.memory_space<vmem>>, %arg11: memref<128x32xbf16, #tpu.memory_space<vmem>>, %arg12: memref<32x32xbf16, #tpu.memory_space<vmem>>, %arg13: memref<1x32xf32, #tpu.memory_space<vmem>>, %arg14: memref<32x128xbf16, #tpu.memory_space<vmem>>, %arg15: memref<1x128xf32, #tpu.memory_space<vmem>>, %arg16: memref<2x128xf32, #tpu.memory_space<vmem>>) attributes {dimension_semantics = [], scalar_prefetch = 0 : i64, scratch_operands = 0 : i64, tpu.core_type = #tpu.core_type<tc>} {
    %c0 = arith.constant 0 : index
    %c0_0 = arith.constant 0 : index
    %0 = vector.load %arg0[%c0, %c0_0] : memref<32x64xbf16, #tpu.memory_space<vmem>>, vector<32x64xbf16>
    %cst = arith.constant 0.000000e+00 : f32
    %1 = vector.broadcast %cst : f32 to vector<16x256xf32>
    %c0_1 = arith.constant 0 : index
    %c0_2 = arith.constant 0 : index
    %c0_3 = arith.constant 0 : index
    %2 = vector.load %arg1[%c0_1, %c0_2, %c0_3] : memref<7x16x32xbf16, #tpu.memory_space<vmem>>, vector<1x16x32xbf16>
    %3 = vector.shape_cast %2 : vector<1x16x32xbf16> to vector<16x32xbf16>
    %cst_4 = arith.constant dense<0.000000e+00> : vector<16x64xf32>
    %4 = tpu.matmul %3, %0, %cst_4 {dimension_numbers = #tpu.dot_dimension_numbers<[1], [0], [0], [1], [0, 0, 1, 1], [], []>} : vector<16x32xbf16>, vector<32x64xbf16>, vector<16x64xf32> -> vector<16x64xf32>
    %5 = arith.truncf %4 : vector<16x64xf32> to vector<16x64xbf16>
    %c0_5 = arith.constant 0 : index
    %c0_6 = arith.constant 0 : index
    %c0_7 = arith.constant 0 : index
    %6 = vector.load %arg2[%c0_5, %c0_6, %c0_7] : memref<7x64x256xbf16, #tpu.memory_space<vmem>>, vector<1x64x256xbf16>
    %7 = vector.shape_cast %6 : vector<1x64x256xbf16> to vector<64x256xbf16>
    %cst_8 = arith.constant dense<0.000000e+00> : vector<16x256xf32>
    %8 = tpu.matmul %5, %7, %cst_8 {dimension_numbers = #tpu.dot_dimension_numbers<[1], [0], [0], [1], [0, 0, 1, 1], [], []>} : vector<16x64xbf16>, vector<64x256xbf16>, vector<16x256xf32> -> vector<16x256xf32>
    %9 = arith.addf %1, %8 : vector<16x256xf32>
    %c1 = arith.constant 1 : index
    %c0_9 = arith.constant 0 : index
    %c0_10 = arith.constant 0 : index
    %10 = vector.load %arg1[%c1, %c0_9, %c0_10] : memref<7x16x32xbf16, #tpu.memory_space<vmem>>, vector<1x16x32xbf16>
    %11 = vector.shape_cast %10 : vector<1x16x32xbf16> to vector<16x32xbf16>
    %cst_11 = arith.constant dense<0.000000e+00> : vector<16x64xf32>
    %12 = tpu.matmul %11, %0, %cst_11 {dimension_numbers = #tpu.dot_dimension_numbers<[1], [0], [0], [1], [0, 0, 1, 1], [], []>} : vector<16x32xbf16>, vector<32x64xbf16>, vector<16x64xf32> -> vector<16x64xf32>
    %13 = arith.truncf %12 : vector<16x64xf32> to vector<16x64xbf16>
    %c1_12 = arith.constant 1 : index
    %c0_13 = arith.constant 0 : index
    %c0_14 = arith.constant 0 : index
    %14 = vector.load %arg2[%c1_12, %c0_13, %c0_14] : memref<7x64x256xbf16, #tpu.memory_space<vmem>>, vector<1x64x256xbf16>
    %15 = vector.shape_cast %14 : vector<1x64x256xbf16> to vector<64x256xbf16>
    %cst_15 = arith.constant dense<0.000000e+00> : vector<16x256xf32>
    %16 = tpu.matmul %13, %15, %cst_15 {dimension_numbers = #tpu.dot_dimension_numbers<[1], [0], [0], [1], [0, 0, 1, 1], [], []>} : vector<16x64xbf16>, vector<64x256xbf16>, vector<16x256xf32> -> vector<16x256xf32>
    %17 = arith.addf %9, %16 : vector<16x256xf32>
    %c2 = arith.constant 2 : index
    %c0_16 = arith.constant 0 : index
    %c0_17 = arith.constant 0 : index
    %18 = vector.load %arg1[%c2, %c0_16, %c0_17] : memref<7x16x32xbf16, #tpu.memory_space<vmem>>, vector<1x16x32xbf16>
    %19 = vector.shape_cast %18 : vector<1x16x32xbf16> to vector<16x32xbf16>
    %cst_18 = arith.constant dense<0.000000e+00> : vector<16x64xf32>
    %20 = tpu.matmul %19, %0, %cst_18 {dimension_numbers = #tpu.dot_dimension_numbers<[1], [0], [0], [1], [0, 0, 1, 1], [], []>} : vector<16x32xbf16>, vector<32x64xbf16>, vector<16x64xf32> -> vector<16x64xf32>
    %21 = arith.truncf %20 : vector<16x64xf32> to vector<16x64xbf16>
    %c2_19 = arith.constant 2 : index
    %c0_20 = arith.constant 0 : index
    %c0_21 = arith.constant 0 : index
    %22 = vector.load %arg2[%c2_19, %c0_20, %c0_21] : memref<7x64x256xbf16, #tpu.memory_space<vmem>>, vector<1x64x256xbf16>
    %23 = vector.shape_cast %22 : vector<1x64x256xbf16> to vector<64x256xbf16>
    %cst_22 = arith.constant dense<0.000000e+00> : vector<16x256xf32>
    %24 = tpu.matmul %21, %23, %cst_22 {dimension_numbers = #tpu.dot_dimension_numbers<[1], [0], [0], [1], [0, 0, 1, 1], [], []>} : vector<16x64xbf16>, vector<64x256xbf16>, vector<16x256xf32> -> vector<16x256xf32>
    %25 = arith.addf %17, %24 : vector<16x256xf32>
    %c3 = arith.constant 3 : index
    %c0_23 = arith.constant 0 : index
    %c0_24 = arith.constant 0 : index
    %26 = vector.load %arg1[%c3, %c0_23, %c0_24] : memref<7x16x32xbf16, #tpu.memory_space<vmem>>, vector<1x16x32xbf16>
    %27 = vector.shape_cast %26 : vector<1x16x32xbf16> to vector<16x32xbf16>
    %cst_25 = arith.constant dense<0.000000e+00> : vector<16x64xf32>
    %28 = tpu.matmul %27, %0, %cst_25 {dimension_numbers = #tpu.dot_dimension_numbers<[1], [0], [0], [1], [0, 0, 1, 1], [], []>} : vector<16x32xbf16>, vector<32x64xbf16>, vector<16x64xf32> -> vector<16x64xf32>
    %29 = arith.truncf %28 : vector<16x64xf32> to vector<16x64xbf16>
    %c3_26 = arith.constant 3 : index
    %c0_27 = arith.constant 0 : index
    %c0_28 = arith.constant 0 : index
    %30 = vector.load %arg2[%c3_26, %c0_27, %c0_28] : memref<7x64x256xbf16, #tpu.memory_space<vmem>>, vector<1x64x256xbf16>
    %31 = vector.shape_cast %30 : vector<1x64x256xbf16> to vector<64x256xbf16>
    %cst_29 = arith.constant dense<0.000000e+00> : vector<16x256xf32>
    %32 = tpu.matmul %29, %31, %cst_29 {dimension_numbers = #tpu.dot_dimension_numbers<[1], [0], [0], [1], [0, 0, 1, 1], [], []>} : vector<16x64xbf16>, vector<64x256xbf16>, vector<16x256xf32> -> vector<16x256xf32>
    %33 = arith.addf %25, %32 : vector<16x256xf32>
    %c4 = arith.constant 4 : index
    %c0_30 = arith.constant 0 : index
    %c0_31 = arith.constant 0 : index
    %34 = vector.load %arg1[%c4, %c0_30, %c0_31] : memref<7x16x32xbf16, #tpu.memory_space<vmem>>, vector<1x16x32xbf16>
    %35 = vector.shape_cast %34 : vector<1x16x32xbf16> to vector<16x32xbf16>
    %cst_32 = arith.constant dense<0.000000e+00> : vector<16x64xf32>
    %36 = tpu.matmul %35, %0, %cst_32 {dimension_numbers = #tpu.dot_dimension_numbers<[1], [0], [0], [1], [0, 0, 1, 1], [], []>} : vector<16x32xbf16>, vector<32x64xbf16>, vector<16x64xf32> -> vector<16x64xf32>
    %37 = arith.truncf %36 : vector<16x64xf32> to vector<16x64xbf16>
    %c4_33 = arith.constant 4 : index
    %c0_34 = arith.constant 0 : index
    %c0_35 = arith.constant 0 : index
    %38 = vector.load %arg2[%c4_33, %c0_34, %c0_35] : memref<7x64x256xbf16, #tpu.memory_space<vmem>>, vector<1x64x256xbf16>
    %39 = vector.shape_cast %38 : vector<1x64x256xbf16> to vector<64x256xbf16>
    %cst_36 = arith.constant dense<0.000000e+00> : vector<16x256xf32>
    %40 = tpu.matmul %37, %39, %cst_36 {dimension_numbers = #tpu.dot_dimension_numbers<[1], [0], [0], [1], [0, 0, 1, 1], [], []>} : vector<16x64xbf16>, vector<64x256xbf16>, vector<16x256xf32> -> vector<16x256xf32>
    %41 = arith.addf %33, %40 : vector<16x256xf32>
    %c5 = arith.constant 5 : index
    %c0_37 = arith.constant 0 : index
    %c0_38 = arith.constant 0 : index
    %42 = vector.load %arg1[%c5, %c0_37, %c0_38] : memref<7x16x32xbf16, #tpu.memory_space<vmem>>, vector<1x16x32xbf16>
    %43 = vector.shape_cast %42 : vector<1x16x32xbf16> to vector<16x32xbf16>
    %cst_39 = arith.constant dense<0.000000e+00> : vector<16x64xf32>
    %44 = tpu.matmul %43, %0, %cst_39 {dimension_numbers = #tpu.dot_dimension_numbers<[1], [0], [0], [1], [0, 0, 1, 1], [], []>} : vector<16x32xbf16>, vector<32x64xbf16>, vector<16x64xf32> -> vector<16x64xf32>
    %45 = arith.truncf %44 : vector<16x64xf32> to vector<16x64xbf16>
    %c5_40 = arith.constant 5 : index
    %c0_41 = arith.constant 0 : index
    %c0_42 = arith.constant 0 : index
    %46 = vector.load %arg2[%c5_40, %c0_41, %c0_42] : memref<7x64x256xbf16, #tpu.memory_space<vmem>>, vector<1x64x256xbf16>
    %47 = vector.shape_cast %46 : vector<1x64x256xbf16> to vector<64x256xbf16>
    %cst_43 = arith.constant dense<0.000000e+00> : vector<16x256xf32>
    %48 = tpu.matmul %45, %47, %cst_43 {dimension_numbers = #tpu.dot_dimension_numbers<[1], [0], [0], [1], [0, 0, 1, 1], [], []>} : vector<16x64xbf16>, vector<64x256xbf16>, vector<16x256xf32> -> vector<16x256xf32>
    %49 = arith.addf %41, %48 : vector<16x256xf32>
    %c6 = arith.constant 6 : index
    %c0_44 = arith.constant 0 : index
    %c0_45 = arith.constant 0 : index
    %50 = vector.load %arg1[%c6, %c0_44, %c0_45] : memref<7x16x32xbf16, #tpu.memory_space<vmem>>, vector<1x16x32xbf16>
    %51 = vector.shape_cast %50 : vector<1x16x32xbf16> to vector<16x32xbf16>
    %cst_46 = arith.constant dense<0.000000e+00> : vector<16x64xf32>
    %52 = tpu.matmul %51, %0, %cst_46 {dimension_numbers = #tpu.dot_dimension_numbers<[1], [0], [0], [1], [0, 0, 1, 1], [], []>} : vector<16x32xbf16>, vector<32x64xbf16>, vector<16x64xf32> -> vector<16x64xf32>
    %53 = arith.truncf %52 : vector<16x64xf32> to vector<16x64xbf16>
    %c6_47 = arith.constant 6 : index
    %c0_48 = arith.constant 0 : index
    %c0_49 = arith.constant 0 : index
    %54 = vector.load %arg2[%c6_47, %c0_48, %c0_49] : memref<7x64x256xbf16, #tpu.memory_space<vmem>>, vector<1x64x256xbf16>
    %55 = vector.shape_cast %54 : vector<1x64x256xbf16> to vector<64x256xbf16>
    %cst_50 = arith.constant dense<0.000000e+00> : vector<16x256xf32>
    %56 = tpu.matmul %53, %55, %cst_50 {dimension_numbers = #tpu.dot_dimension_numbers<[1], [0], [0], [1], [0, 0, 1, 1], [], []>} : vector<16x64xbf16>, vector<64x256xbf16>, vector<16x256xf32> -> vector<16x256xf32>
    %57 = arith.addf %49, %56 : vector<16x256xf32>
    %c0_51 = arith.constant 0 : index
    %c0_52 = arith.constant 0 : index
    %58 = vector.load %arg3[%c0_51, %c0_52] : memref<1x256xf32, #tpu.memory_space<vmem>>, vector<1x256xf32>
    %59 = vector.broadcast %58 : vector<1x256xf32> to vector<16x256xf32>
    %60 = arith.addf %57, %59 : vector<16x256xf32>
    %cst_53 = arith.constant 0.000000e+00 : f32
    %61 = vector.broadcast %cst_53 : f32 to vector<16x256xf32>
    %62 = arith.cmpf oge, %60, %61 : vector<16x256xf32>
    %cst_54 = arith.constant 1.000000e-01 : f32
    %63 = vector.broadcast %cst_54 : f32 to vector<16x256xf32>
    %64 = arith.mulf %63, %60 : vector<16x256xf32>
    %65 = arith.select %62, %60, %64 : vector<16x256xi1>, vector<16x256xf32>
    %66 = arith.truncf %65 : vector<16x256xf32> to vector<16x256xbf16>
    %cst_55 = arith.constant 0.000000e+00 : f32
    %67 = vector.broadcast %cst_55 : f32 to vector<8x128xf32>
    %c0_56 = arith.constant 0 : index
    %c0_57 = arith.constant 0 : index
    %c0_58 = arith.constant 0 : index
    %68 = vector.load %arg4[%c0_56, %c0_57, %c0_58] : memref<5x8x16xbf16, #tpu.memory_space<vmem>>, vector<1x8x16xbf16>
    %69 = vector.shape_cast %68 : vector<1x8x16xbf16> to vector<8x16xbf16>
    %cst_59 = arith.constant dense<0.000000e+00> : vector<8x256xf32>
    %70 = tpu.matmul %69, %66, %cst_59 {dimension_numbers = #tpu.dot_dimension_numbers<[1], [0], [0], [1], [0, 0, 1, 1], [], []>} : vector<8x16xbf16>, vector<16x256xbf16>, vector<8x256xf32> -> vector<8x256xf32>
    %71 = arith.truncf %70 : vector<8x256xf32> to vector<8x256xbf16>
    %c0_60 = arith.constant 0 : index
    %c0_61 = arith.constant 0 : index
    %c0_62 = arith.constant 0 : index
    %72 = vector.load %arg5[%c0_60, %c0_61, %c0_62] : memref<5x256x128xbf16, #tpu.memory_space<vmem>>, vector<1x256x128xbf16>
    %73 = vector.shape_cast %72 : vector<1x256x128xbf16> to vector<256x128xbf16>
    %cst_63 = arith.constant dense<0.000000e+00> : vector<8x128xf32>
    %74 = tpu.matmul %71, %73, %cst_63 {dimension_numbers = #tpu.dot_dimension_numbers<[1], [0], [0], [1], [0, 0, 1, 1], [], []>} : vector<8x256xbf16>, vector<256x128xbf16>, vector<8x128xf32> -> vector<8x128xf32>
    %75 = arith.addf %67, %74 : vector<8x128xf32>
    %c1_64 = arith.constant 1 : index
    %c0_65 = arith.constant 0 : index
    %c0_66 = arith.constant 0 : index
    %76 = vector.load %arg4[%c1_64, %c0_65, %c0_66] : memref<5x8x16xbf16, #tpu.memory_space<vmem>>, vector<1x8x16xbf16>
    %77 = vector.shape_cast %76 : vector<1x8x16xbf16> to vector<8x16xbf16>
    %cst_67 = arith.constant dense<0.000000e+00> : vector<8x256xf32>
    %78 = tpu.matmul %77, %66, %cst_67 {dimension_numbers = #tpu.dot_dimension_numbers<[1], [0], [0], [1], [0, 0, 1, 1], [], []>} : vector<8x16xbf16>, vector<16x256xbf16>, vector<8x256xf32> -> vector<8x256xf32>
    %79 = arith.truncf %78 : vector<8x256xf32> to vector<8x256xbf16>
    %c1_68 = arith.constant 1 : index
    %c0_69 = arith.constant 0 : index
    %c0_70 = arith.constant 0 : index
    %80 = vector.load %arg5[%c1_68, %c0_69, %c0_70] : memref<5x256x128xbf16, #tpu.memory_space<vmem>>, vector<1x256x128xbf16>
    %81 = vector.shape_cast %80 : vector<1x256x128xbf16> to vector<256x128xbf16>
    %cst_71 = arith.constant dense<0.000000e+00> : vector<8x128xf32>
    %82 = tpu.matmul %79, %81, %cst_71 {dimension_numbers = #tpu.dot_dimension_numbers<[1], [0], [0], [1], [0, 0, 1, 1], [], []>} : vector<8x256xbf16>, vector<256x128xbf16>, vector<8x128xf32> -> vector<8x128xf32>
    %83 = arith.addf %75, %82 : vector<8x128xf32>
    %c2_72 = arith.constant 2 : index
    %c0_73 = arith.constant 0 : index
    %c0_74 = arith.constant 0 : index
    %84 = vector.load %arg4[%c2_72, %c0_73, %c0_74] : memref<5x8x16xbf16, #tpu.memory_space<vmem>>, vector<1x8x16xbf16>
    %85 = vector.shape_cast %84 : vector<1x8x16xbf16> to vector<8x16xbf16>
    %cst_75 = arith.constant dense<0.000000e+00> : vector<8x256xf32>
    %86 = tpu.matmul %85, %66, %cst_75 {dimension_numbers = #tpu.dot_dimension_numbers<[1], [0], [0], [1], [0, 0, 1, 1], [], []>} : vector<8x16xbf16>, vector<16x256xbf16>, vector<8x256xf32> -> vector<8x256xf32>
    %87 = arith.truncf %86 : vector<8x256xf32> to vector<8x256xbf16>
    %c2_76 = arith.constant 2 : index
    %c0_77 = arith.constant 0 : index
    %c0_78 = arith.constant 0 : index
    %88 = vector.load %arg5[%c2_76, %c0_77, %c0_78] : memref<5x256x128xbf16, #tpu.memory_space<vmem>>, vector<1x256x128xbf16>
    %89 = vector.shape_cast %88 : vector<1x256x128xbf16> to vector<256x128xbf16>
    %cst_79 = arith.constant dense<0.000000e+00> : vector<8x128xf32>
    %90 = tpu.matmul %87, %89, %cst_79 {dimension_numbers = #tpu.dot_dimension_numbers<[1], [0], [0], [1], [0, 0, 1, 1], [], []>} : vector<8x256xbf16>, vector<256x128xbf16>, vector<8x128xf32> -> vector<8x128xf32>
    %91 = arith.addf %83, %90 : vector<8x128xf32>
    %c3_80 = arith.constant 3 : index
    %c0_81 = arith.constant 0 : index
    %c0_82 = arith.constant 0 : index
    %92 = vector.load %arg4[%c3_80, %c0_81, %c0_82] : memref<5x8x16xbf16, #tpu.memory_space<vmem>>, vector<1x8x16xbf16>
    %93 = vector.shape_cast %92 : vector<1x8x16xbf16> to vector<8x16xbf16>
    %cst_83 = arith.constant dense<0.000000e+00> : vector<8x256xf32>
    %94 = tpu.matmul %93, %66, %cst_83 {dimension_numbers = #tpu.dot_dimension_numbers<[1], [0], [0], [1], [0, 0, 1, 1], [], []>} : vector<8x16xbf16>, vector<16x256xbf16>, vector<8x256xf32> -> vector<8x256xf32>
    %95 = arith.truncf %94 : vector<8x256xf32> to vector<8x256xbf16>
    %c3_84 = arith.constant 3 : index
    %c0_85 = arith.constant 0 : index
    %c0_86 = arith.constant 0 : index
    %96 = vector.load %arg5[%c3_84, %c0_85, %c0_86] : memref<5x256x128xbf16, #tpu.memory_space<vmem>>, vector<1x256x128xbf16>
    %97 = vector.shape_cast %96 : vector<1x256x128xbf16> to vector<256x128xbf16>
    %cst_87 = arith.constant dense<0.000000e+00> : vector<8x128xf32>
    %98 = tpu.matmul %95, %97, %cst_87 {dimension_numbers = #tpu.dot_dimension_numbers<[1], [0], [0], [1], [0, 0, 1, 1], [], []>} : vector<8x256xbf16>, vector<256x128xbf16>, vector<8x128xf32> -> vector<8x128xf32>
    %99 = arith.addf %91, %98 : vector<8x128xf32>
    %c4_88 = arith.constant 4 : index
    %c0_89 = arith.constant 0 : index
    %c0_90 = arith.constant 0 : index
    %100 = vector.load %arg4[%c4_88, %c0_89, %c0_90] : memref<5x8x16xbf16, #tpu.memory_space<vmem>>, vector<1x8x16xbf16>
    %101 = vector.shape_cast %100 : vector<1x8x16xbf16> to vector<8x16xbf16>
    %cst_91 = arith.constant dense<0.000000e+00> : vector<8x256xf32>
    %102 = tpu.matmul %101, %66, %cst_91 {dimension_numbers = #tpu.dot_dimension_numbers<[1], [0], [0], [1], [0, 0, 1, 1], [], []>} : vector<8x16xbf16>, vector<16x256xbf16>, vector<8x256xf32> -> vector<8x256xf32>
    %103 = arith.truncf %102 : vector<8x256xf32> to vector<8x256xbf16>
    %c4_92 = arith.constant 4 : index
    %c0_93 = arith.constant 0 : index
    %c0_94 = arith.constant 0 : index
    %104 = vector.load %arg5[%c4_92, %c0_93, %c0_94] : memref<5x256x128xbf16, #tpu.memory_space<vmem>>, vector<1x256x128xbf16>
    %105 = vector.shape_cast %104 : vector<1x256x128xbf16> to vector<256x128xbf16>
    %cst_95 = arith.constant dense<0.000000e+00> : vector<8x128xf32>
    %106 = tpu.matmul %103, %105, %cst_95 {dimension_numbers = #tpu.dot_dimension_numbers<[1], [0], [0], [1], [0, 0, 1, 1], [], []>} : vector<8x256xbf16>, vector<256x128xbf16>, vector<8x128xf32> -> vector<8x128xf32>
    %107 = arith.addf %99, %106 : vector<8x128xf32>
    %c0_96 = arith.constant 0 : index
    %c0_97 = arith.constant 0 : index
    %108 = vector.load %arg6[%c0_96, %c0_97] : memref<1x128xf32, #tpu.memory_space<vmem>>, vector<1x128xf32>
    %109 = vector.broadcast %108 : vector<1x128xf32> to vector<8x128xf32>
    %110 = arith.addf %107, %109 : vector<8x128xf32>
    %cst_98 = arith.constant 0.000000e+00 : f32
    %111 = vector.broadcast %cst_98 : f32 to vector<8x128xf32>
    %112 = arith.cmpf oge, %110, %111 : vector<8x128xf32>
    %cst_99 = arith.constant 1.000000e-01 : f32
    %113 = vector.broadcast %cst_99 : f32 to vector<8x128xf32>
    %114 = arith.mulf %113, %110 : vector<8x128xf32>
    %115 = arith.select %112, %110, %114 : vector<8x128xi1>, vector<8x128xf32>
    %116 = arith.truncf %115 : vector<8x128xf32> to vector<8x128xbf16>
    %cst_100 = arith.constant 0.000000e+00 : f32
    %117 = vector.broadcast %cst_100 : f32 to vector<8x128xf32>
    %c0_101 = arith.constant 0 : index
    %c0_102 = arith.constant 0 : index
    %c0_103 = arith.constant 0 : index
    %118 = vector.load %arg7[%c0_101, %c0_102, %c0_103] : memref<3x8x8xbf16, #tpu.memory_space<vmem>>, vector<1x8x8xbf16>
    %119 = vector.shape_cast %118 : vector<1x8x8xbf16> to vector<8x8xbf16>
    %cst_104 = arith.constant dense<0.000000e+00> : vector<8x128xf32>
    %120 = tpu.matmul %119, %116, %cst_104 {dimension_numbers = #tpu.dot_dimension_numbers<[1], [0], [0], [1], [0, 0, 1, 1], [], []>} : vector<8x8xbf16>, vector<8x128xbf16>, vector<8x128xf32> -> vector<8x128xf32>
    %121 = arith.truncf %120 : vector<8x128xf32> to vector<8x128xbf16>
    %c0_105 = arith.constant 0 : index
    %c0_106 = arith.constant 0 : index
    %c0_107 = arith.constant 0 : index
    %122 = vector.load %arg8[%c0_105, %c0_106, %c0_107] : memref<3x128x128xbf16, #tpu.memory_space<vmem>>, vector<1x128x128xbf16>
    %123 = vector.shape_cast %122 : vector<1x128x128xbf16> to vector<128x128xbf16>
    %cst_108 = arith.constant dense<0.000000e+00> : vector<8x128xf32>
    %124 = tpu.matmul %121, %123, %cst_108 {dimension_numbers = #tpu.dot_dimension_numbers<[1], [0], [0], [1], [0, 0, 1, 1], [], []>} : vector<8x128xbf16>, vector<128x128xbf16>, vector<8x128xf32> -> vector<8x128xf32>
    %125 = arith.addf %117, %124 : vector<8x128xf32>
    %c1_109 = arith.constant 1 : index
    %c0_110 = arith.constant 0 : index
    %c0_111 = arith.constant 0 : index
    %126 = vector.load %arg7[%c1_109, %c0_110, %c0_111] : memref<3x8x8xbf16, #tpu.memory_space<vmem>>, vector<1x8x8xbf16>
    %127 = vector.shape_cast %126 : vector<1x8x8xbf16> to vector<8x8xbf16>
    %cst_112 = arith.constant dense<0.000000e+00> : vector<8x128xf32>
    %128 = tpu.matmul %127, %116, %cst_112 {dimension_numbers = #tpu.dot_dimension_numbers<[1], [0], [0], [1], [0, 0, 1, 1], [], []>} : vector<8x8xbf16>, vector<8x128xbf16>, vector<8x128xf32> -> vector<8x128xf32>
    %129 = arith.truncf %128 : vector<8x128xf32> to vector<8x128xbf16>
    %c1_113 = arith.constant 1 : index
    %c0_114 = arith.constant 0 : index
    %c0_115 = arith.constant 0 : index
    %130 = vector.load %arg8[%c1_113, %c0_114, %c0_115] : memref<3x128x128xbf16, #tpu.memory_space<vmem>>, vector<1x128x128xbf16>
    %131 = vector.shape_cast %130 : vector<1x128x128xbf16> to vector<128x128xbf16>
    %cst_116 = arith.constant dense<0.000000e+00> : vector<8x128xf32>
    %132 = tpu.matmul %129, %131, %cst_116 {dimension_numbers = #tpu.dot_dimension_numbers<[1], [0], [0], [1], [0, 0, 1, 1], [], []>} : vector<8x128xbf16>, vector<128x128xbf16>, vector<8x128xf32> -> vector<8x128xf32>
    %133 = arith.addf %125, %132 : vector<8x128xf32>
    %c2_117 = arith.constant 2 : index
    %c0_118 = arith.constant 0 : index
    %c0_119 = arith.constant 0 : index
    %134 = vector.load %arg7[%c2_117, %c0_118, %c0_119] : memref<3x8x8xbf16, #tpu.memory_space<vmem>>, vector<1x8x8xbf16>
    %135 = vector.shape_cast %134 : vector<1x8x8xbf16> to vector<8x8xbf16>
    %cst_120 = arith.constant dense<0.000000e+00> : vector<8x128xf32>
    %136 = tpu.matmul %135, %116, %cst_120 {dimension_numbers = #tpu.dot_dimension_numbers<[1], [0], [0], [1], [0, 0, 1, 1], [], []>} : vector<8x8xbf16>, vector<8x128xbf16>, vector<8x128xf32> -> vector<8x128xf32>
    %137 = arith.truncf %136 : vector<8x128xf32> to vector<8x128xbf16>
    %c2_121 = arith.constant 2 : index
    %c0_122 = arith.constant 0 : index
    %c0_123 = arith.constant 0 : index
    %138 = vector.load %arg8[%c2_121, %c0_122, %c0_123] : memref<3x128x128xbf16, #tpu.memory_space<vmem>>, vector<1x128x128xbf16>
    %139 = vector.shape_cast %138 : vector<1x128x128xbf16> to vector<128x128xbf16>
    %cst_124 = arith.constant dense<0.000000e+00> : vector<8x128xf32>
    %140 = tpu.matmul %137, %139, %cst_124 {dimension_numbers = #tpu.dot_dimension_numbers<[1], [0], [0], [1], [0, 0, 1, 1], [], []>} : vector<8x128xbf16>, vector<128x128xbf16>, vector<8x128xf32> -> vector<8x128xf32>
    %141 = arith.addf %133, %140 : vector<8x128xf32>
    %c0_125 = arith.constant 0 : index
    %c0_126 = arith.constant 0 : index
    %142 = vector.load %arg9[%c0_125, %c0_126] : memref<1x128xf32, #tpu.memory_space<vmem>>, vector<1x128xf32>
    %143 = vector.broadcast %142 : vector<1x128xf32> to vector<8x128xf32>
    %144 = arith.addf %141, %143 : vector<8x128xf32>
    %cst_127 = arith.constant 0.000000e+00 : f32
    %145 = vector.broadcast %cst_127 : f32 to vector<8x128xf32>
    %146 = arith.cmpf oge, %144, %145 : vector<8x128xf32>
    %cst_128 = arith.constant 1.000000e-01 : f32
    %147 = vector.broadcast %cst_128 : f32 to vector<8x128xf32>
    %148 = arith.mulf %147, %144 : vector<8x128xf32>
    %149 = arith.select %146, %144, %148 : vector<8x128xi1>, vector<8x128xf32>
    %150 = arith.truncf %149 : vector<8x128xf32> to vector<8x128xbf16>
    %c0_129 = arith.constant 0 : index
    %c0_130 = arith.constant 0 : index
    %151 = vector.load %arg10[%c0_129, %c0_130] : memref<2x8xbf16, #tpu.memory_space<vmem>>, vector<2x8xbf16>
    %cst_131 = arith.constant dense<0.000000e+00> : vector<2x128xf32>
    %152 = tpu.matmul %151, %150, %cst_131 {dimension_numbers = #tpu.dot_dimension_numbers<[1], [0], [0], [1], [0, 0, 1, 1], [], []>} : vector<2x8xbf16>, vector<8x128xbf16>, vector<2x128xf32> -> vector<2x128xf32>
    %153 = arith.truncf %152 : vector<2x128xf32> to vector<2x128xbf16>
    %c0_132 = arith.constant 0 : index
    %c0_133 = arith.constant 0 : index
    %154 = vector.load %arg11[%c0_132, %c0_133] : memref<128x32xbf16, #tpu.memory_space<vmem>>, vector<128x32xbf16>
    %cst_134 = arith.constant dense<0.000000e+00> : vector<2x32xf32>
    %155 = tpu.matmul %153, %154, %cst_134 {dimension_numbers = #tpu.dot_dimension_numbers<[1], [0], [0], [1], [0, 0, 1, 1], [], []>} : vector<2x128xbf16>, vector<128x32xbf16>, vector<2x32xf32> -> vector<2x32xf32>
    %156 = arith.truncf %155 : vector<2x32xf32> to vector<2x32xbf16>
    %c0_135 = arith.constant 0 : index
    %c0_136 = arith.constant 0 : index
    %157 = vector.load %arg12[%c0_135, %c0_136] : memref<32x32xbf16, #tpu.memory_space<vmem>>, vector<32x32xbf16>
    %cst_137 = arith.constant dense<0.000000e+00> : vector<2x32xf32>
    %158 = tpu.matmul %156, %157, %cst_137 {dimension_numbers = #tpu.dot_dimension_numbers<[1], [0], [0], [1], [0, 0, 1, 1], [], []>} : vector<2x32xbf16>, vector<32x32xbf16>, vector<2x32xf32> -> vector<2x32xf32>
    %c0_138 = arith.constant 0 : index
    %c0_139 = arith.constant 0 : index
    %159 = vector.load %arg13[%c0_138, %c0_139] : memref<1x32xf32, #tpu.memory_space<vmem>>, vector<1x32xf32>
    %160 = vector.broadcast %159 : vector<1x32xf32> to vector<2x32xf32>
    %161 = arith.addf %158, %160 : vector<2x32xf32>
    %cst_140 = arith.constant 0.000000e+00 : f32
    %162 = vector.broadcast %cst_140 : f32 to vector<2x32xf32>
    %163 = arith.cmpf oge, %161, %162 : vector<2x32xf32>
    %cst_141 = arith.constant 1.000000e-01 : f32
    %164 = vector.broadcast %cst_141 : f32 to vector<2x32xf32>
    %165 = arith.mulf %164, %161 : vector<2x32xf32>
    %166 = arith.select %163, %161, %165 : vector<2x32xi1>, vector<2x32xf32>
    %167 = arith.truncf %166 : vector<2x32xf32> to vector<2x32xbf16>
    %c0_142 = arith.constant 0 : index
    %c0_143 = arith.constant 0 : index
    %168 = vector.load %arg14[%c0_142, %c0_143] : memref<32x128xbf16, #tpu.memory_space<vmem>>, vector<32x128xbf16>
    %cst_144 = arith.constant dense<0.000000e+00> : vector<2x128xf32>
    %169 = tpu.matmul %167, %168, %cst_144 {dimension_numbers = #tpu.dot_dimension_numbers<[1], [0], [0], [1], [0, 0, 1, 1], [], []>} : vector<2x32xbf16>, vector<32x128xbf16>, vector<2x128xf32> -> vector<2x128xf32>
    %c0_145 = arith.constant 0 : index
    %c0_146 = arith.constant 0 : index
    %170 = vector.load %arg15[%c0_145, %c0_146] : memref<1x128xf32, #tpu.memory_space<vmem>>, vector<1x128xf32>
    %171 = vector.broadcast %170 : vector<1x128xf32> to vector<2x128xf32>
    %172 = arith.addf %169, %171 : vector<2x128xf32>
    %c0_147 = arith.constant 0 : index
    %c0_148 = arith.constant 0 : index
    %173 = vector.load %arg16[%c0_147, %c0_148] : memref<2x128xf32, #tpu.memory_space<vmem>>, vector<2x128xf32>
    tpu.vector_store %arg16[%c0_147, %c0_148], %172 {strides = array<i32>} : memref<2x128xf32, #tpu.memory_space<vmem>>, vector<2x128xf32>,
    return
  }
}

</mosaic_0001>

<bundles_post_ra>
// kernel: forward.1
= control target key start
LH: loop header
LB: loop body
LE: loop exit
PB: predicated region body
PF: predicated region fallthrough
CT: control target
= control target key end

     0   :  { %s4878_s0 = inlined_call_operand.vmem [shape: bf16[32,64], index: 0, kind: input, shape index: {}]   ;;  %s4879_s1 = inlined_call_operand.vmem [shape: bf16[7,16,32], index: 1, kind: input, shape index: {}]   ;;  %s4880_s2 = inlined_call_operand.vmem [shape: bf16[7,64,256], index: 2, kind: input, shape index: {}]   ;;  %s4881_s3 = inlined_call_operand.vmem [shape: f32[1,256], index: 3, kind: input, shape index: {}]   ;;  %s4882_s4 = inlined_call_operand.vmem [shape: bf16[5,8,16], index: 4, kind: input, shape index: {}]   ;;  %s4883_s5 = inlined_call_operand.vmem [shape: bf16[5,256,128], index: 5, kind: input, shape index: {}]   ;;  %s4884_s6 = inlined_call_operand.vmem [shape: f32[1,128], index: 6, kind: input, shape index: {}]   ;;  %s4885_s7 = inlined_call_operand.vmem [shape: bf16[3,8,8], index: 7, kind: input, shape index: {}]   ;;  %s4886_s8 = inlined_call_operand.hbm [shape: bf16[3,128,128], index: 8, kind: input, shape index: {}]   ;;  %s4887_s9 = inlined_call_operand.vmem [shape: f32[1,128], index: 9, kind: input, shape index: {}]   ;;  %s4888_s10 = inlined_call_operand.vmem [shape: bf16[2,8], index: 10, kind: input, shape index: {}]   ;;  %s4889_s11 = inlined_call_operand.vmem [shape: bf16[128,32], index: 11, kind: input, shape index: {}]   ;;  %s4890_s12 = inlined_call_operand.vmem [shape: bf16[32,32], index: 12, kind: input, shape index: {}]   ;;  %s4891_s13 = inlined_call_operand.vmem [shape: f32[1,32], index: 13, kind: input, shape index: {}]   ;;  %s4892_s14 = inlined_call_operand.vmem [shape: bf16[32,128], index: 14, kind: input, shape index: {}]   ;;  %s4893_s15 = inlined_call_operand.vmem [shape: f32[1,128], index: 15, kind: input, shape index: {}]   ;;  %s4894_s16 = inlined_call_operand.hbm [shape: f32[2,128], index: 16, kind: output, shape index: {}]  }
   0x1   :  { %4896 = sst [smem:[#allocation8_spill]] %s4878_s0 }
   0x2   :  { %21 = vsyncpa [#allocation3], 0 }
   0x3   :  { %22 = vsyncpa [#allocation4], 0  ;;  %s4093_s21 = smov [#allocation2]   ;;  %s4045_s25 = scalar_lea.hbm %s4886_s8, 3072 }
   0x4   :  { %s44_s22 = sshll.u32 %s4093_s21, 4  ;;  %p4046_p0 = scmp.ne.s32.totalorder %s4886_s8, %s4045_s25  ;;  %s45_s22 = int_to_ptr.vmem [resolvable:$true] %s44_s22 }
   0x5   :  { %p4049_p1 = scmp.lt.u32.totalorder %s4045_s25, %s4886_s8 }
   0x7   :  { %p4051_p2 = pnand %p4049_p1, %p4046_p0 }
   0x9   :  { %4054 = shalt.err (!%p4051_p2)
}
   0xa   :  { %s4055_s30 = scalar_lea.vmem %s45_s22, 3072  ;;  %p4060_p4 = scmp.lt.s32.totalorder %s45_s22, %s45_s22 }
   0xb   :  { %p4056_p3 = scmp.ne.s32.totalorder %s45_s22, %s4055_s30  ;;  %p4061_p5 = scmp.lt.s32.totalorder %s4055_s30, %s4055_s30 }
   0xd   :  { %p4062_p6 = por %p4061_p5, %p4060_p4 }
   0xf   :  { %p4063_p7 = pnand %p4062_p6, %p4056_p3 }
  0x11   :  { %4066 = shalt.err (!%p4063_p7)
}
  0x12   :  { %s4094_s0 = smov 64   ;;  %s4095_s17 = smov 4  }
  0x13   :  { %50 = dma.hbm_to_vmem [thread:$0]  %s4886_s8, 3072, %s45_s22, [#allocation3], %s4094_s0, %s4094_s0, %s4095_s17  }
  0x14   :  { %4089 = dma.done.wait [#allocation3], 3072  }
  0x15   :  { %4090 = vsyncadd [#allocation3], 4294964224  ;;  %v4096_v0 = vmov 0.0   ;;  %vm4097_vm0 = vmmov 0   ;;  %s4897_s23 = sld [smem:[#allocation8_spill]]  ;;  %v3838_v3 = vld [vmem:[%s4879_s1 + $0x8] sm:$0xff]  }
  0x16   :  { %3637 = vmatprep.subr.bf16.mxu1 %v4096_v0  ;;  %3641 = vmatprep.mubr.msk.bf16.mxu1 %vm4097_vm0, %v4096_v0  ;;  %v3839_v4 = vld [vmem:[%s4879_s1] sm:$0xff]   ;;  %vm92_vm1 = vcmask 261120   ;;  %v3850_v7 = vld [vmem:[%s4880_s2 + $0x54] ss:$8 sps:$4 sm:$0xff]   ;;  %v3848_v9 = vld [vmem:[%s4880_s2 + $0x50] ss:$8 sps:$4 sm:$0xff]  }
  0x17   :  { %3629 = vmatprep.subr.bf16.mxu0 %v4096_v0  ;;  %3633 = vmatprep.mubr.msk.bf16.mxu0 %vm4097_vm0, %v4096_v0  ;;  %v3845_v5 = vld [vmem:[%s4880_s2 + $0x40] ss:$8 sps:$4 sm:$0xff]   ;;  %v3847_v6 = vld [vmem:[%s4880_s2 + $0x44] ss:$8 sps:$4 sm:$0xff]   ;;  %v3840_v8 = vld [vmem:[%s4879_s1 + $0x10] sm:$0xff]   ;;  %v4098_v19 = vmov 0  }
  0x18   :  { %v3853_v10 = vld [vmem:[%s4880_s2 + $0x64] ss:$8 sps:$4 sm:$0xff]   ;;  %v3851_v11 = vld [vmem:[%s4880_s2 + $0x60] ss:$8 sps:$4 sm:$0xff]   ;;  %v3841_v12 = vld [vmem:[%s4879_s1 + $0x18] sm:$0xff]   ;;  %vm248_vm2 = vcmask 523264  }
  0x19   :  { %v3842_v13 = vld [vmem:[%s4879_s1 + $0x20] sm:$0xff]   ;;  %v3843_v14 = vld [vmem:[%s4879_s1 + $0x28] sm:$0xff]   ;;  %v3844_v15 = vld [vmem:[%s4879_s1 + $0x30] sm:$0xff]   ;;  %vm1172_vm7 = vcmask 130048   ;;  %vm2275_vm9 = vcmask 1043456   ;;  %vm2271_vm10 = vcmask 64512  }
  0x1a   :  { %v3856_v16 = vld [vmem:[%s4880_s2 + $0x74] ss:$8 sps:$4 sm:$0xff]   ;;  %v3854_v17 = vld [vmem:[%s4880_s2 + $0x70] ss:$8 sps:$4 sm:$0xff]   ;;  %v3859_v18 = vld [vmem:[%s4880_s2 + $0x4] ss:$8 sps:$4 sm:$0xff]  }
  0x1b   :  { %v3836_v1 = vld [vmem:[%s4897_s23] sm:$0xff]   ;;  %v3837_v2 = vld [vmem:[%s4897_s23 + $0x8] sm:$0xff]   ;;  %v3862_v29 = vld [vmem:[%s4880_s2 + $0x14] ss:$8 sps:$4 sm:$0xff]  }
  0x1c   :  { %3638 = vmatpush3.bf16.msra.mxu1 %v3836_v1  ;;  %3630 = vmatpush3.bf16.msra.mxu0 %v3836_v1  ;;  %v3857_v25 = vld [vmem:[%s4880_s2] ss:$8 sps:$4 sm:$0xff]   ;;  %v3860_v32 = vld [vmem:[%s4880_s2 + $0x10] ss:$8 sps:$4 sm:$0xff]   ;;  %v3865_v33 = vld [vmem:[%s4880_s2 + $0x24] ss:$8 sps:$4 sm:$0xff]  }
  0x1d   :  { %3639 = vmatprep.subr.bf16.mxu1 %v4096_v0  ;;  %3631 = vmatprep.subr.bf16.mxu0 %v4096_v0  ;;  %v3863_v36 = vld [vmem:[%s4880_s2 + $0x20] ss:$8 sps:$4 sm:$0xff]   ;;  %v3868_v38 = vld [vmem:[%s4880_s2 + $0x34] ss:$8 sps:$4 sm:$0xff]   ;;  %v3866_v41 = vld [vmem:[%s4880_s2 + $0x30] ss:$8 sps:$4 sm:$0xff]  }
  0x1e   :  { %v3871_v42 = vld [vmem:[%s4880_s2 + $0x84] ss:$8 sps:$4 sm:$0xff]   ;;  %v3869_v45 = vld [vmem:[%s4880_s2 + $0x80] ss:$8 sps:$4 sm:$0xff]   ;;  %v3874_v47 = vld [vmem:[%s4880_s2 + $0x94] ss:$8 sps:$4 sm:$0xff]  }
  0x1f   :  { %v3872_v50 = vld [vmem:[%s4880_s2 + $0x90] ss:$8 sps:$4 sm:$0xff]   ;;  %v3877_v51 = vld [vmem:[%s4880_s2 + $0xa4] ss:$8 sps:$4 sm:$0xff]   ;;  %v3875_v54 = vld [vmem:[%s4880_s2 + $0xa0] ss:$8 sps:$4 sm:$0xff]  }
  0x20   :  { %3640 = vmatpush3.bf16.msra.mxu1 %v3837_v2  ;;  %3632 = vmatpush3.bf16.msra.mxu0 %v3837_v2  ;;  %v3880_v56 = vld [vmem:[%s4880_s2 + $0xb4] ss:$8 sps:$4 sm:$0xff]   ;;  %v3878_v59 = vld [vmem:[%s4880_s2 + $0xb0] ss:$8 sps:$4 sm:$0xff]   ;;  %v3883_v60 = vld [vmem:[%s4880_s2 + $0xc4] ss:$8 sps:$4 sm:$0xff]  }
  0x21   :  { %3645 = vmatprep.subr.bf16.mxu1 %v4096_v0  ;;  %252 = vmatprep.subr.bf16.mxu0 %v3847_v6  ;;  %v3881_v63 = vld [vmem:[%s4880_s2 + $0xc0] ss:$8 sps:$4 sm:$0xff]   ;;  %v3889_v6 = vld [vmem:[%s4880_s2 + $0xe4] ss:$8 sps:$4 sm:$0xff]  }
  0x23   :  { %3642 = vmatmul.mubr.msk.bf16.vlgmr.msra.gmra.mrb[0].mxu1 %vm92_vm1, %v3838_v3  ;;  %3634 = vmatmul.mubr.msk.bf16.vlgmr.msra.gmra.mrb[0].mxu0 %vm92_vm1, %v3839_v4 }
  0x24   :  { %3646 = vmatpush3.bf16.msra.mxu1 %v3836_v1  ;;  %3649 = vmatprep.mubr.msk.bf16.mxu1 %vm4097_vm0, %v4096_v0 }
  0x25   :  { %3647 = vmatprep.subr.bf16.mxu1 %v4096_v0  ;;  %253 = vmatpush1.bf16.msra.mxu0 %v3845_v5  ;;  %v3884_v5 = vld [vmem:[%s4880_s2 + $0xd0] ss:$8 sps:$4 sm:$0xff]  }
  0x26   :  { %254 = vmatprep.subr.bf16.mxu0 %v3850_v7  ;;  %284 = vmatprep.mubr.bf16.mxu0 %v4098_v19 }
  0x28   :  { %3648 = vmatpush3.bf16.msra.mxu1 %v3837_v2 }
  0x29   :  { %3653 = vmatprep.subr.bf16.mxu1 %v4096_v0  ;;  %255 = vmatpush1.bf16.msra.mxu0 %v3848_v9  ;;  %v3887_v9 = vld [vmem:[%s4880_s2 + $0xe0] ss:$8 sps:$4 sm:$0xff]  }
  0x2a   :  { %256 = vmatprep.subr.bf16.mxu0 %v3853_v10 }
  0x2b   :  { %3650 = vmatmul.mubr.msk.bf16.vlgmr.msra.gmra.mrb[4].mxu1 %vm92_vm1, %v3840_v8 }
  0x2c   :  { %3654 = vmatpush3.bf16.msra.mxu1 %v3836_v1  ;;  %3657 = vmatprep.mubr.msk.bf16.mxu1 %vm4097_vm0, %v4096_v0 }
  0x2d   :  { %3655 = vmatprep.subr.bf16.mxu1 %v4096_v0  ;;  %257 = vmatpush1.bf16.msra.mxu0 %v3851_v11  ;;  %v3892_v11 = vld [vmem:[%s4880_s2 + $0xf4] ss:$8 sps:$4 sm:$0xff]  }
  0x2e   :  { %258 = vmatprep.subr.bf16.mxu0 %v3856_v16  ;;  %v3893_v16 = vld [vmem:[%s4880_s2 + $0x100] ss:$8 sps:$4 sm:$0xff]  }
  0x30   :  { %3656 = vmatpush3.bf16.msra.mxu1 %v3837_v2 }
  0x31   :  { %3661 = vmatprep.subr.bf16.mxu1 %v4096_v0  ;;  %259 = vmatpush1.bf16.msra.mxu0 %v3854_v17  ;;  %v3898_v17 = vld [vmem:[%s4880_s2 + $0x114] ss:$8 sps:$4 sm:$0xff]  }
  0x32   :  { %338 = vmatprep.subr.bf16.mxu0 %v3859_v18  ;;  %v3896_v18 = vld [vmem:[%s4880_s2 + $0x110] ss:$8 sps:$4 sm:$0xff]  }
  0x33   :  { %3658 = vmatmul.mubr.msk.bf16.vlgmr.msra.gmra.mrb[8].mxu1 %vm92_vm1, %v3841_v12 }
  0x34   :  { %3662 = vmatpush3.bf16.msra.mxu1 %v3836_v1  ;;  %3665 = vmatprep.mubr.msk.bf16.mxu1 %vm4097_vm0, %v4096_v0 }
  0x35   :  { %3663 = vmatprep.subr.bf16.mxu1 %v4096_v0 }
  0x38   :  { %3664 = vmatpush3.bf16.msra.mxu1 %v3837_v2 }
  0x39   :  { %3669 = vmatprep.subr.bf16.mxu1 %v4096_v0 }
  0x3b   :  { %3666 = vmatmul.mubr.msk.bf16.vlgmr.msra.gmra.mrb[12].mxu1 %vm92_vm1, %v3842_v13 }
  0x3c   :  { %3670 = vmatpush3.bf16.msra.mxu1 %v3836_v1  ;;  %3673 = vmatprep.mubr.msk.bf16.mxu1 %vm4097_vm0, %v4096_v0 }
  0x3d   :  { %3671 = vmatprep.subr.bf16.mxu1 %v4096_v0 }
  0x40   :  { %3672 = vmatpush3.bf16.msra.mxu1 %v3837_v2 }
  0x41   :  { %3677 = vmatprep.subr.bf16.mxu1 %v4096_v0 }
  0x43   :  { %3674 = vmatmul.mubr.msk.bf16.vlgmr.msra.gmra.mrb[16].mxu1 %vm92_vm1, %v3843_v14  ;;  %v3890_v14 = vld [vmem:[%s4880_s2 + $0xf0] ss:$8 sps:$4 sm:$0xff]  }
  0x44   :  { %3678 = vmatpush3.bf16.msra.mxu1 %v3836_v1  ;;  %3681 = vmatprep.mubr.msk.bf16.mxu1 %vm4097_vm0, %v4096_v0 }
  0x45   :  { %3679 = vmatprep.subr.bf16.mxu1 %v4096_v0 }
  0x48   :  { %3680 = vmatpush3.bf16.msra.mxu1 %v3837_v2  ;;  %v3886_v2 = vld [vmem:[%s4880_s2 + $0xd4] ss:$8 sps:$4 sm:$0xff]  }
  0x4b   :  { %3682 = vmatmul.mubr.msk.bf16.vlgmr.msra.gmra.mrb[20].mxu1 %vm92_vm1, %v3844_v15  ;;  %v3895_v15 = vld [vmem:[%s4880_s2 + $0x104] ss:$8 sps:$4 sm:$0xff]  }
  0x4c   :  { %1208 = vmatprep.mubr.bf16.mxu1 %v4098_v19 }
  0xf6   :  { %v191_v20 = vpop.f32.mrb[0].mxu1  ;;  %v130_v21 = vpop.f32.mrb[0].mxu0 }
  0xf7   :  { %v3643_v22 = vpop.f32.mrb[1].mxu1  ;;  %v3635_v23 = vpop.f32.mrb[1].mxu0 }
  0xf8   :  { %v194_v24 = vpop.f32.mrb[2].mxu1  ;;  %v133_v26 = vpop.f32.mrb[2].mxu0  ;;  %v3904_v22 = vld [vmem:[%s4880_s2 + $0x134] ss:$8 sps:$4 sm:$0xff]   ;;  %v3902_v23 = vld [vmem:[%s4880_s2 + $0x130] ss:$8 sps:$4 sm:$0xff]  }
  0xf9   :  { %v198_v27 = vpack.c.bf16 %v194_v24, %v191_v20  ;;  %v3644_v28 = vpop.f32.mrb[3].mxu1  ;;  %v137_v30 = vpack.c.bf16 %v133_v26, %v130_v21  ;;  %v3636_v31 = vpop.f32.mrb[3].mxu0  ;;  %v3901_v20 = vld [vmem:[%s4880_s2 + $0x124] ss:$8 sps:$4 sm:$0xff]   ;;  %v3899_v21 = vld [vmem:[%s4880_s2 + $0x120] ss:$8 sps:$4 sm:$0xff]  }
  0xfa   :  { %v3907_v24 = vld [vmem:[%s4880_s2 + $0x144] ss:$8 sps:$4 sm:$0xff]   ;;  %v3910_v26 = vld [vmem:[%s4880_s2 + $0x154] ss:$8 sps:$4 sm:$0xff]   ;;  %v3914_v31 = vld [vmem:[%s4880_s2 + $0x170] ss:$8 sps:$4 sm:$0xff]  }
  0xfb   :  { %3068 = vmatmul.mubr.msk.bf16.vlgmr.msra.gmra.mrb[4].mxu0 %vm248_vm2, %v198_v27  ;;  %v3908_v27 = vld [vmem:[%s4880_s2 + $0x150] ss:$8 sps:$4 sm:$0xff]   ;;  %v3913_v28 = vld [vmem:[%s4880_s2 + $0x164] ss:$8 sps:$4 sm:$0xff]  }
  0xfc   :  { %339 = vmatpush1.bf16.msra.mxu0 %v3857_v25  ;;  %370 = vmatprep.mubr.bf16.mxu0 %v4098_v19  ;;  %v3905_v25 = vld [vmem:[%s4880_s2 + $0x140] ss:$8 sps:$4 sm:$0xff]  }
  0xfd   :  { %340 = vmatprep.subr.bf16.mxu0 %v3862_v29  ;;  %v3911_v29 = vld [vmem:[%s4880_s2 + $0x160] ss:$8 sps:$4 sm:$0xff]  }
  0xfe   :  { %v426_v34 = vpop.f32.mrb[4].mxu1 }
  0xff   :  { %v3651_v35 = vpop.f32.mrb[5].mxu1 }
 0x100   :  { %341 = vmatpush1.bf16.msra.mxu0 %v3860_v32  ;;  %v429_v37 = vpop.f32.mrb[6].mxu1  ;;  %v3919_v32 = vld [vmem:[%s4880_s2 + $0x184] ss:$8 sps:$4 sm:$0xff]   ;;  %v3920_v35 = vld [vmem:[%s4880_s2 + $0x190] ss:$8 sps:$4 sm:$0xff]  }
 0x101   :  { %342 = vmatprep.subr.bf16.mxu0 %v3865_v33  ;;  %v433_v39 = vpack.c.bf16 %v429_v37, %v426_v34  ;;  %v3652_v40 = vpop.f32.mrb[7].mxu1  ;;  %v3917_v33 = vld [vmem:[%s4880_s2 + $0x180] ss:$8 sps:$4 sm:$0xff]   ;;  %v3922_v34 = vld [vmem:[%s4880_s2 + $0x194] ss:$8 sps:$4 sm:$0xff]  }
 0x102   :  { %v3923_v37 = vld [vmem:[%s4880_s2 + $0x1a0] ss:$8 sps:$4 sm:$0xff]   ;;  %v1143_v40 = vlaneseq }
 0x104   :  { %343 = vmatpush1.bf16.msra.mxu0 %v3863_v36  ;;  %v3925_v36 = vld [vmem:[%s4880_s2 + $0x1a4] ss:$8 sps:$4 sm:$0xff]  }
 0x105   :  { %344 = vmatprep.subr.bf16.mxu0 %v3868_v38  ;;  %v3928_v38 = vld [vmem:[%s4880_s2 + $0x1b4] ss:$8 sps:$4 sm:$0xff]  }
 0x106   :  { %v578_v43 = vpop.f32.mrb[8].mxu1 }
 0x107   :  { %v3659_v44 = vpop.f32.mrb[9].mxu1 }
 0x108   :  { %345 = vmatpush1.bf16.msra.mxu0 %v3866_v41  ;;  %v581_v46 = vpop.f32.mrb[10].mxu1  ;;  %v1144_v41 = vshrl.u32 %v1143_v40, 7 }
 0x109   :  { %486 = vmatprep.subr.bf16.mxu0 %v3871_v42  ;;  %v585_v48 = vpack.c.bf16 %v581_v46, %v578_v43  ;;  %v3660_v49 = vpop.f32.mrb[11].mxu1  ;;  %v1141_v43 = vld [vmem:[%s4881_s3] sm:$0x3] }
 0x10a   :  { %v1145_v42 = vsub.s32 0, %v1144_v41  ;;  %v1149_v44 = vsub.s32 1, %v1144_v41 }
 0x10b   :  { %3077 = vmatmul.mubr.msk.bf16.vlgmr.msra.gmra.mrb[4].mxu0 %vm248_vm2, %v137_v30  ;;  %v3916_v30 = vld [vmem:[%s4880_s2 + $0x174] ss:$8 sps:$4 sm:$0xff]  }
 0x10c   :  { %487 = vmatpush1.bf16.msra.mxu0 %v3869_v45  ;;  %518 = vmatprep.mubr.bf16.mxu0 %v4098_v19  ;;  %v1146_v45 = vrot.slane %v1141_v43, %v1145_v42  ;;  %v1150_v46 = vrot.slane %v1141_v43, %v1149_v44 }
 0x10d   :  { %488 = vmatprep.subr.bf16.mxu0 %v3874_v47 }
 0x10e   :  { %v4328_v52 = vpop.f32.mrb[12].mxu1 }
 0x10f   :  { %v3667_v53 = vpop.f32.mrb[13].mxu1 }
 0x110   :  { %489 = vmatpush1.bf16.msra.mxu0 %v3872_v50  ;;  %v733_v55 = vpop.f32.mrb[14].mxu1 }
 0x111   :  { %490 = vmatprep.subr.bf16.mxu0 %v3877_v51  ;;  %v737_v57 = vpack.c.bf16 %v733_v55, %v4328_v52  ;;  %v3668_v58 = vpop.f32.mrb[15].mxu1 }
 0x114   :  { %491 = vmatpush1.bf16.msra.mxu0 %v3875_v54 }
 0x115   :  { %492 = vmatprep.subr.bf16.mxu0 %v3880_v56 }
 0x116   :  { %v4343_v61 = vpop.f32.mrb[16].mxu1 }
 0x117   :  { %v3675_v62 = vpop.f32.mrb[17].mxu1 }
 0x118   :  { %493 = vmatpush1.bf16.msra.mxu0 %v3878_v59  ;;  %v4348_v1 = vpop.f32.mrb[18].mxu1 }
 0x119   :  { %638 = vmatprep.subr.bf16.mxu0 %v3883_v60  ;;  %v889_v3 = vpack.c.bf16 %v4348_v1, %v4343_v61  ;;  %v3676_v4 = vpop.f32.mrb[19].mxu1 }
 0x11a   :  { %v3250_v4 = vld [vmem:[%s4882_s4 + $0x8] sm:$0xf] }
 0x11b   :  { %3098 = vmatmul.mubr.msk.bf16.vlgmr.msra.gmra.mrb[4].mxu0 %vm248_vm2, %v433_v39  ;;  %v3926_v39 = vld [vmem:[%s4880_s2 + $0x1b0] ss:$8 sps:$4 sm:$0xff]  }
 0x11c   :  { %639 = vmatpush1.bf16.msra.mxu0 %v3881_v63  ;;  %670 = vmatprep.mubr.bf16.mxu0 %v4098_v19 }
 0x11d   :  { %640 = vmatprep.subr.bf16.mxu0 %v3886_v2  ;;  %v3929_v2 = vld [vmem:[%s4883_s5 + $0x140] sm:$0xff]  }
 0x11e   :  { %v4363_v7 = vpop.f32.mrb[20].mxu1 }
 0x11f   :  { %v3683_v8 = vpop.f32.mrb[21].mxu1 }
 0x120   :  { %641 = vmatpush1.bf16.msra.mxu0 %v3884_v5  ;;  %v4368_v10 = vpop.f32.mrb[22].mxu1  ;;  %v3930_v5 = vld [vmem:[%s4883_s5 + $0x100] sm:$0xff]   ;;  %v3932_v8 = vld [vmem:[%s4883_s5 + $0x108] sm:$0xff]  }
 0x121   :  { %642 = vmatprep.subr.bf16.mxu0 %v3889_v6  ;;  %v1041_v12 = vpack.c.bf16 %v4368_v10, %v4363_v7  ;;  %v3684_v13 = vpop.f32.mrb[23].mxu1  ;;  %v3931_v6 = vld [vmem:[%s4883_s5 + $0x148] sm:$0xff]   ;;  %v3945_v7 = vld [vmem:[%s4883_s5 + $0xc0] sm:$0xff]  }
 0x122   :  { %v3184_v10 = vld [vmem:[%s4882_s4 + $0x4] sm:$0xf]  ;;  %v3935_v13 = vld [vmem:[%s4883_s5 + $0x158] sm:$0xff]  }
 0x124   :  { %643 = vmatpush1.bf16.msra.mxu0 %v3887_v9  ;;  %v3933_v9 = vld [vmem:[%s4883_s5 + $0x150] sm:$0xff]  }
 0x125   :  { %644 = vmatprep.subr.bf16.mxu0 %v3892_v11  ;;  %v3934_v11 = vld [vmem:[%s4883_s5 + $0x110] sm:$0xff]  }
 0x128   :  { %645 = vmatpush1.bf16.msra.mxu0 %v3890_v14  ;;  %v3947_v14 = vld [vmem:[%s4883_s5 + $0xc8] sm:$0xff]  }
 0x129   :  { %790 = vmatprep.subr.bf16.mxu0 %v3895_v15  ;;  %v3936_v15 = vld [vmem:[%s4883_s5 + $0x118] sm:$0xff]  }
 0x12b   :  { %3119 = vmatmul.mubr.msk.bf16.vlgmr.msra.gmra.mrb[4].mxu0 %vm248_vm2, %v585_v48 }
 0x12c   :  { %791 = vmatpush1.bf16.msra.mxu0 %v3893_v16  ;;  %822 = vmatprep.mubr.bf16.mxu0 %v4098_v19  ;;  %v3948_v16 = vld [vmem:[%s4883_s5 + $0x88] sm:$0xff]  }
 0x12d   :  { %792 = vmatprep.subr.bf16.mxu0 %v3898_v17  ;;  %v3937_v17 = vld [vmem:[%s4883_s5 + $0x160] sm:$0xff]  }
 0x130   :  { %793 = vmatpush1.bf16.msra.mxu0 %v3896_v18  ;;  %v3949_v18 = vld [vmem:[%s4883_s5 + $0xd0] sm:$0xff]  }
 0x131   :  { %794 = vmatprep.subr.bf16.mxu0 %v3901_v20  ;;  %v3938_v20 = vld [vmem:[%s4883_s5 + $0x120] sm:$0xff]  }
 0x134   :  { %795 = vmatpush1.bf16.msra.mxu0 %v3899_v21  ;;  %v3950_v21 = vld [vmem:[%s4883_s5 + $0x90] sm:$0xff]  }
 0x135   :  { %796 = vmatprep.subr.bf16.mxu0 %v3904_v22  ;;  %v3939_v22 = vld [vmem:[%s4883_s5 + $0x168] sm:$0xff]  }
 0x138   :  { %797 = vmatpush1.bf16.msra.mxu0 %v3902_v23  ;;  %v3951_v23 = vld [vmem:[%s4883_s5 + $0xd8] sm:$0xff]  }
 0x139   :  { %942 = vmatprep.subr.bf16.mxu0 %v3907_v24  ;;  %v3940_v24 = vld [vmem:[%s4883_s5 + $0x128] sm:$0xff]  }
 0x13b   :  { %3140 = vmatmul.mubr.msk.bf16.vlgmr.msra.gmra.mrb[4].mxu0 %vm248_vm2, %v737_v57 }
 0x13c   :  { %943 = vmatpush1.bf16.msra.mxu0 %v3905_v25  ;;  %974 = vmatprep.mubr.bf16.mxu0 %v4098_v19  ;;  %v3952_v25 = vld [vmem:[%s4883_s5 + $0x98] sm:$0xff]  }
 0x13d   :  { %944 = vmatprep.subr.bf16.mxu0 %v3910_v26  ;;  %v3941_v26 = vld [vmem:[%s4883_s5 + $0x170] sm:$0xff]  }
 0x140   :  { %945 = vmatpush1.bf16.msra.mxu0 %v3908_v27  ;;  %v3953_v27 = vld [vmem:[%s4883_s5 + $0xe0] sm:$0xff]  }
 0x141   :  { %946 = vmatprep.subr.bf16.mxu0 %v3913_v28  ;;  %v3942_v28 = vld [vmem:[%s4883_s5 + $0x130] sm:$0xff]  }
 0x144   :  { %947 = vmatpush1.bf16.msra.mxu0 %v3911_v29  ;;  %v3954_v29 = vld [vmem:[%s4883_s5 + $0xa0] sm:$0xff]  }
 0x145   :  { %948 = vmatprep.subr.bf16.mxu0 %v3916_v30  ;;  %v3943_v30 = vld [vmem:[%s4883_s5 + $0x178] sm:$0xff]  }
 0x148   :  { %949 = vmatpush1.bf16.msra.mxu0 %v3914_v31  ;;  %v3944_v31 = vld [vmem:[%s4883_s5 + $0x138] sm:$0xff]  }
 0x149   :  { %1094 = vmatprep.subr.bf16.mxu0 %v3919_v32  ;;  %v3955_v32 = vld [vmem:[%s4883_s5 + $0xe8] sm:$0xff]  }
 0x14b   :  { %3161 = vmatmul.mubr.msk.bf16.vlgmr.msra.gmra.mrb[4].mxu0 %vm248_vm2, %v889_v3  ;;  %v1171_v3 = vld [vmem:[%s4882_s4] sm:$0xf] }
 0x14c   :  { %1095 = vmatpush1.bf16.msra.mxu0 %v3917_v33  ;;  %1126 = vmatprep.mubr.bf16.mxu0 %v4098_v19  ;;  %v3956_v33 = vld [vmem:[%s4883_s5 + $0xa8] sm:$0xff]  }
 0x14d   :  { %1096 = vmatprep.subr.bf16.mxu0 %v3922_v34  ;;  %v3957_v34 = vld [vmem:[%s4883_s5 + $0xf0] sm:$0xff]  }
 0x150   :  { %1097 = vmatpush1.bf16.msra.mxu0 %v3920_v35  ;;  %v3958_v35 = vld [vmem:[%s4883_s5 + $0xb0] sm:$0xff]  }
 0x151   :  { %1098 = vmatprep.subr.bf16.mxu0 %v3925_v36  ;;  %v3959_v36 = vld [vmem:[%s4883_s5 + $0xf8] sm:$0xff]  }
 0x154   :  { %1099 = vmatpush1.bf16.msra.mxu0 %v3923_v37  ;;  %v3960_v37 = vld [vmem:[%s4883_s5 + $0xb8] sm:$0xff]  }
 0x155   :  { %1100 = vmatprep.subr.bf16.mxu0 %v3928_v38  ;;  %v3961_v38 = vld [vmem:[%s4883_s5 + $0x40] sm:$0xff]  }
 0x158   :  { %1101 = vmatpush1.bf16.msra.mxu0 %v3926_v39 }
 0x15b   :  { %3182 = vmatmul.mubr.msk.bf16.vlgmr.msra.gmra.mrb[4].mxu0 %vm248_vm2, %v1041_v12  ;;  %v3946_v12 = vld [vmem:[%s4883_s5 + $0x80] sm:$0xff]  }
 0x15c   :  { %1641 = vmatprep.mubr.bf16.mxu0 %v4098_v19 }
 0x22e   :  { %v1128_v47 = vpop.f32.mrb[4].mxu0 }
 0x22f   :  { %v1153_v48 = vadd.f32 %v1146_v45, %v1128_v47  ;;  %v1130_v49 = vpop.f32.mrb[5].mxu0 }
 0x230   :  { %v1154_v50 = vadd.f32 %v1150_v46, %v1130_v49  ;;  %v1132_v51 = vpop.f32.mrb[6].mxu0 }
 0x231   :  { %v1161_v52 = vmul.f32 0.1, %v1153_v48  ;;  %v1155_v53 = vadd.f32 %v1146_v45, %v1132_v51  ;;  %v1134_v54 = vpop.f32.mrb[7].mxu0  ;;  %vm1157_vm3 = vcmp.ge.f32.partialorder %v1153_v48, 0.0 }
 0x232   :  { %v1162_v55 = vmul.f32 0.1, %v1154_v50  ;;  %v1156_v56 = vadd.f32 %v1150_v46, %v1134_v54  ;;  %vm1158_vm4 = vcmp.ge.f32.partialorder %v1154_v50, 0.0  ;;  %v3350_v54 = vld [vmem:[%s4882_s4 + $0x10] sm:$0xf] }
 0x233   :  { %vm1159_vm5 = vcmp.ge.f32.partialorder %v1155_v53, 0.0  ;;  %v1163_v57 = vmul.f32 0.1, %v1155_v53  ;;  %v1165_v59 = vsel %vm1157_vm3, %v1153_v48, %v1161_v52 }
 0x234   :  { %vm1160_vm6 = vcmp.ge.f32.partialorder %v1156_v56, 0.0  ;;  %v1164_v58 = vmul.f32 0.1, %v1156_v56  ;;  %v1166_v61 = vsel %vm1158_vm4, %v1154_v50, %v1162_v55 }
 0x235   :  { %v1167_v60 = vsel %vm1159_vm5, %v1155_v53, %v1163_v57  ;;  %v3962_v53 = vld [vmem:[%s4883_s5] sm:$0xff]   ;;  %v3963_v57 = vld [vmem:[%s4883_s5 + $0x48] sm:$0xff]  }
 0x236   :  { %v4461_v62 = vpack.c.bf16 %v1167_v60, %v1165_v59  ;;  %v1168_v63 = vsel %vm1160_vm6, %v1156_v56, %v1164_v58  ;;  %v3964_v59 = vld [vmem:[%s4883_s5 + $0x8] sm:$0xff]   ;;  %v3965_v60 = vld [vmem:[%s4883_s5 + $0x50] sm:$0xff]  }
 0x237   :  { %v4463_v1 = vpack.c.bf16 %v1168_v63, %v1166_v61  ;;  %v3966_v61 = vld [vmem:[%s4883_s5 + $0x10] sm:$0xff]   ;;  %v3967_v63 = vld [vmem:[%s4883_s5 + $0x58] sm:$0xff]  }
 0x239   :  { %1176 = vmatprep.subr.bf16.mxu1 %v4463_v1  ;;  %1609 = vmatprep.subr.bf16.mxu0 %v4463_v1 }
 0x23a   :  { %1177 = vmatpush1.bf16.msra.mxu1 %v4461_v62  ;;  %1610 = vmatpush1.bf16.msra.mxu0 %v4461_v62 }
 0x23b   :  { %1256 = vmatprep.subr.bf16.mxu1 %v4463_v1  ;;  %3513 = vmatprep.subr.bf16.mxu0 %v3929_v2  ;;  %v3968_v2 = vld [vmem:[%s4883_s5 + $0x18] sm:$0xff]  }
 0x23d   :  { %3183 = vmatmul.mubr.msk.bf16.vlgmr.msra.gmra.mrb[24].mxu1 %vm1172_vm7, %v1171_v3  ;;  %3251 = vmatmul.mubr.msk.bf16.vlgmr.msra.gmra.mrb[8].mxu0 %vm1172_vm7, %v3250_v4  ;;  %v3969_v3 = vld [vmem:[%s4883_s5 + $0x60] sm:$0xff]  }
 0x23e   :  { %1257 = vmatpush1.bf16.msra.mxu1 %v4461_v62  ;;  %3514 = vmatpush3.bf16.msra.mxu0 %v3930_v5  ;;  %v3970_v4 = vld [vmem:[%s4883_s5 + $0x20] sm:$0xff]   ;;  %v3971_v5 = vld [vmem:[%s4883_s5 + $0x68] sm:$0xff]  }
 0x23f   :  { %3515 = vmatprep.subr.bf16.mxu0 %v3931_v6  ;;  %1288 = vmatprep.mubr.bf16.mxu1 %v4098_v19  ;;  %v3972_v6 = vld [vmem:[%s4883_s5 + $0x28] sm:$0xff]  }
 0x240   :  { %3469 = vmatprep.subr.bf16.mxu1 %v3945_v7  ;;  %v3973_v7 = vld [vmem:[%s4883_s5 + $0x70] sm:$0xff]  }
 0x242   :  { %3516 = vmatpush3.bf16.msra.mxu0 %v3932_v8  ;;  %v3974_v8 = vld [vmem:[%s4883_s5 + $0x30] sm:$0xff]  }
 0x243   :  { %3517 = vmatprep.subr.bf16.mxu0 %v3933_v9  ;;  %v3975_v9 = vld [vmem:[%s4883_s5 + $0x78] sm:$0xff]  }
 0x245   :  { %3185 = vmatmul.mubr.msk.bf16.vlgmr.msra.gmra.mrb[28].mxu1 %vm1172_vm7, %v3184_v10  ;;  %v3976_v10 = vld [vmem:[%s4883_s5 + $0x38] sm:$0xff]  }
 0x246   :  { %3518 = vmatpush3.bf16.msra.mxu0 %v3934_v11  ;;  %3470 = vmatpush3.bf16.msra.mxu1 %v3946_v12  ;;  %v3300_v12 = vld [vmem:[%s4882_s4 + $0xc] sm:$0xf] }
 0x247   :  { %3519 = vmatprep.subr.bf16.mxu0 %v3935_v13  ;;  %3471 = vmatprep.subr.bf16.mxu1 %v3947_v14  ;;  %v3977_v13 = vld [vmem:[%s4883_s5 + $0x240] sm:$0xff]  }
 0x248   :  { %v3978_v14 = vld [vmem:[%s4883_s5 + $0x200] sm:$0xff]  }
 0x24a   :  { %3520 = vmatpush3.bf16.msra.mxu0 %v3936_v15  ;;  %3472 = vmatpush3.bf16.msra.mxu1 %v3948_v16  ;;  %v3983_v15 = vld [vmem:[%s4883_s5 + $0x1c8] sm:$0xff]  }
 0x24b   :  { %3521 = vmatprep.subr.bf16.mxu0 %v3937_v17  ;;  %3473 = vmatprep.subr.bf16.mxu1 %v3949_v18  ;;  %v3982_v16 = vld [vmem:[%s4883_s5 + $0x208] sm:$0xff]   ;;  %v3985_v18 = vld [vmem:[%s4883_s5 + $0x250] sm:$0xff]  }
 0x24c   :  { %v3984_v17 = vld [vmem:[%s4883_s5 + $0x188] sm:$0xff]  }
 0x24e   :  { %3522 = vmatpush3.bf16.msra.mxu0 %v3938_v20  ;;  %3474 = vmatpush3.bf16.msra.mxu1 %v3950_v21  ;;  %v3987_v20 = vld [vmem:[%s4883_s5 + $0x1d0] sm:$0xff]  }
 0x24f   :  { %3523 = vmatprep.subr.bf16.mxu0 %v3939_v22  ;;  %3475 = vmatprep.subr.bf16.mxu1 %v3951_v23  ;;  %v3986_v21 = vld [vmem:[%s4883_s5 + $0x210] sm:$0xff]   ;;  %v3989_v23 = vld [vmem:[%s4883_s5 + $0x258] sm:$0xff]  }
 0x250   :  { %v3988_v22 = vld [vmem:[%s4883_s5 + $0x190] sm:$0xff]  }
 0x252   :  { %3524 = vmatpush3.bf16.msra.mxu0 %v3940_v24  ;;  %3476 = vmatpush3.bf16.msra.mxu1 %v3952_v25  ;;  %v3991_v24 = vld [vmem:[%s4883_s5 + $0x1d8] sm:$0xff]  }
 0x253   :  { %3525 = vmatprep.subr.bf16.mxu0 %v3941_v26  ;;  %3477 = vmatprep.subr.bf16.mxu1 %v3953_v27  ;;  %v3990_v25 = vld [vmem:[%s4883_s5 + $0x218] sm:$0xff]   ;;  %v3993_v27 = vld [vmem:[%s4883_s5 + $0x260] sm:$0xff]  }
 0x254   :  { %v3992_v26 = vld [vmem:[%s4883_s5 + $0x198] sm:$0xff]  }
 0x256   :  { %3526 = vmatpush3.bf16.msra.mxu0 %v3942_v28  ;;  %3478 = vmatpush3.bf16.msra.mxu1 %v3954_v29  ;;  %v3995_v28 = vld [vmem:[%s4883_s5 + $0x1e0] sm:$0xff]  }
 0x257   :  { %3527 = vmatprep.subr.bf16.mxu0 %v3943_v30  ;;  %3479 = vmatprep.subr.bf16.mxu1 %v3955_v32  ;;  %v3994_v29 = vld [vmem:[%s4883_s5 + $0x220] sm:$0xff]   ;;  %v3998_v32 = vld [vmem:[%s4883_s5 + $0x228] sm:$0xff]  }
 0x258   :  { %v3996_v30 = vld [vmem:[%s4883_s5 + $0x1a0] sm:$0xff]  }
 0x25a   :  { %3528 = vmatpush3.bf16.msra.mxu0 %v3944_v31  ;;  %3480 = vmatpush3.bf16.msra.mxu1 %v3956_v33  ;;  %v3997_v31 = vld [vmem:[%s4883_s5 + $0x268] sm:$0xff]  }
 0x25b   :  { %2045 = vmatprep.subr.bf16.mxu0 %v4463_v1  ;;  %3481 = vmatprep.subr.bf16.mxu1 %v3957_v34  ;;  %v3999_v33 = vld [vmem:[%s4883_s5 + $0x1e8] sm:$0xff]  }
 0x25c   :  { %v4000_v34 = vld [vmem:[%s4883_s5 + $0x1a8] sm:$0xff]  }
 0x25e   :  { %3482 = vmatpush3.bf16.msra.mxu1 %v3958_v35  ;;  %v4001_v35 = vld [vmem:[%s4883_s5 + $0x270] sm:$0xff]  }
 0x25f   :  { %3483 = vmatprep.subr.bf16.mxu1 %v3959_v36  ;;  %v4002_v36 = vld [vmem:[%s4883_s5 + $0x230] sm:$0xff]  }
 0x262   :  { %3484 = vmatpush3.bf16.msra.mxu1 %v3960_v37  ;;  %v4003_v37 = vld [vmem:[%s4883_s5 + $0x1f0] sm:$0xff]  }
 0x263   :  { %3491 = vmatprep.subr.bf16.mxu1 %v3961_v38  ;;  %v4004_v38 = vld [vmem:[%s4883_s5 + $0x1b0] sm:$0xff]  }
 0x310   :  { %v1210_v39 = vpop.f32.mrb[24].mxu1  ;;  %v1643_v40 = vpop.f32.mrb[8].mxu0 }
 0x311   :  { %v1650_v41 = vpack.c.bf16 %v1643_v40, %v1643_v40  ;;  %v1212_v42 = vpop.f32.mrb[25].mxu1  ;;  %v1645_v43 = vpop.f32.mrb[9].mxu0  ;;  %v1217_v11 = vpack.c.bf16 %v1210_v39, %v1210_v39  ;;  %v4005_v39 = vld [vmem:[%s4883_s5 + $0x278] sm:$0xff]  }
 0x312   :  { %v1651_v44 = vpack.c.bf16 %v1645_v43, %v1645_v43  ;;  %v1214_v45 = vpop.f32.mrb[26].mxu1  ;;  %v1647_v46 = vpop.f32.mrb[10].mxu0  ;;  %v1218_v58 = vpack.c.bf16 %v1212_v42, %v1212_v42  ;;  %v4006_v40 = vld [vmem:[%s4883_s5 + $0x238] sm:$0xff]  }
 0x313   :  { %v1215_v47 = vpop.f32.mrb[27].mxu1  ;;  %v1648_v48 = vpop.f32.mrb[11].mxu0  ;;  %v4008_v42 = vld [vmem:[%s4883_s5 + $0x1b8] sm:$0xff]  }
 0x314   :  { %1813 = vmatprep.mubr.bf16.mxu0 %v1651_v44 }
 0x315   :  { %1814 = vmatmul.mubr.bf16.vlgmr.msra.gmra.mrb[12].mxu0 %v1650_v41  ;;  %v4007_v41 = vld [vmem:[%s4883_s5 + $0x1f8] sm:$0xff]  }
 0x316   :  { %2046 = vmatpush1.bf16.msra.mxu0 %v4461_v62  ;;  %2077 = vmatprep.mubr.bf16.mxu0 %v4098_v19 }
 0x317   :  { %3557 = vmatprep.subr.bf16.mxu0 %v3977_v13  ;;  %v4012_v13 = vld [vmem:[#allocation2 + $0x10] sm:$0xff]  }
 0x318   :  { %v1290_v49 = vpop.f32.mrb[28].mxu1 }
 0x319   :  { %v1292_v50 = vpop.f32.mrb[29].mxu1  ;;  %v1297_v55 = vpack.c.bf16 %v1290_v49, %v1290_v49 }
 0x31a   :  { %v1298_v51 = vpack.c.bf16 %v1292_v50, %v1292_v50  ;;  %v1294_v52 = vpop.f32.mrb[30].mxu1 }
 0x31b   :  { %v1295_v56 = vpop.f32.mrb[31].mxu1 }
 0x31c   :  { %1460 = vmatprep.mubr.bf16.mxu1 %v1298_v51 }
 0x31d   :  { %1461 = vmatmul.mubr.bf16.vlgmr.msra.gmra.mrb[32].mxu1 %v1297_v55  ;;  %3351 = vmatmul.mubr.msk.bf16.vlgmr.msra.gmra.mrb[16].mxu0 %vm1172_vm7, %v3350_v54 }
 0x31e   :  { %3492 = vmatpush3.bf16.msra.mxu1 %v3962_v53  ;;  %1596 = vmatprep.mubr.bf16.mxu1 %v1218_v58 }
 0x31f   :  { %3493 = vmatprep.subr.bf16.mxu1 %v3963_v57  ;;  %3558 = vmatpush3.bf16.msra.mxu0 %v3978_v14  ;;  %v4014_v14 = vld [vmem:[#allocation2 + $0x18] sm:$0xff]  }
 0x322   :  { %3494 = vmatpush3.bf16.msra.mxu1 %v3964_v59 }
 0x323   :  { %3495 = vmatprep.subr.bf16.mxu1 %v3965_v60 }
 0x326   :  { %3496 = vmatpush3.bf16.msra.mxu1 %v3966_v61 }
 0x327   :  { %3497 = vmatprep.subr.bf16.mxu1 %v3967_v63 }
 0x32a   :  { %3498 = vmatpush3.bf16.msra.mxu1 %v3968_v2 }
 0x32b   :  { %3499 = vmatprep.subr.bf16.mxu1 %v3969_v3 }
 0x32e   :  { %3500 = vmatpush3.bf16.msra.mxu1 %v3970_v4 }
 0x32f   :  { %3501 = vmatprep.subr.bf16.mxu1 %v3971_v5 }
 0x332   :  { %3502 = vmatpush3.bf16.msra.mxu1 %v3972_v6 }
 0x333   :  { %3503 = vmatprep.subr.bf16.mxu1 %v3973_v7 }
 0x336   :  { %3504 = vmatpush3.bf16.msra.mxu1 %v3974_v8 }
 0x337   :  { %3505 = vmatprep.subr.bf16.mxu1 %v3975_v9 }
 0x33a   :  { %3506 = vmatpush3.bf16.msra.mxu1 %v3976_v10 }
 0x33b   :  { %1827 = vmatprep.subr.bf16.mxu1 %v4463_v1  ;;  %v3981_v1 = vld [vmem:[%s4883_s5 + $0x248] sm:$0xff]  }
 0x33c   :  { %3559 = vmatprep.subr.bf16.mxu0 %v3981_v1  ;;  %v4020_v1 = vld [vmem:[#allocation2 + $0x30] sm:$0xff]  }
 0x33d   :  { %1597 = vmatmul.mubr.bf16.vlgmr.msra.gmra.mrb[36].mxu1 %v1217_v11  ;;  %3560 = vmatpush3.bf16.msra.mxu0 %v3982_v16  ;;  %v4009_v11 = vld [vmem:[#allocation2] sm:$0xff]  }
 0x33e   :  { %1828 = vmatpush1.bf16.msra.mxu1 %v4461_v62  ;;  %1859 = vmatprep.mubr.bf16.mxu1 %v4098_v19  ;;  %v3979_v62 = vld [vmem:[%s4883_s5 + $0x1c0] sm:$0xff]  }
 0x33f   :  { %v3980_v19 = vld [vmem:[%s4883_s5 + $0x180] sm:$0xff]   ;;  %3535 = vmatprep.subr.bf16.mxu1 %v3979_v62  ;;  %3561 = vmatprep.subr.bf16.mxu0 %v3985_v18 }
 0x340   :  { %v4016_v62 = vld [vmem:[#allocation2 + $0x20] sm:$0xff]  }
 0x341   :  { %3562 = vmatpush3.bf16.msra.mxu0 %v3986_v21 }
 0x342   :  { %3563 = vmatprep.subr.bf16.mxu0 %v3989_v23 }
 0x345   :  { %3301 = vmatmul.mubr.msk.bf16.vlgmr.msra.gmra.mrb[40].mxu1 %vm1172_vm7, %v3300_v12  ;;  %3564 = vmatpush3.bf16.msra.mxu0 %v3990_v25  ;;  %v4010_v12 = vld [vmem:[#allocation2 + $0x8] sm:$0xff]  }
 0x346   :  { %3536 = vmatpush3.bf16.msra.mxu1 %v3980_v19  ;;  %3565 = vmatprep.subr.bf16.mxu0 %v3993_v27  ;;  %v4018_v19 = vld [vmem:[#allocation2 + $0x28] sm:$0xff]   ;;  %v3400_v27 = vld [vmem:[%s4884_s6] ss:$0 sm:$0xff] }
 0x347   :  { %3537 = vmatprep.subr.bf16.mxu1 %v3983_v15 }
 0x349   :  { %3566 = vmatpush3.bf16.msra.mxu0 %v3994_v29 }
 0x34a   :  { %3538 = vmatpush3.bf16.msra.mxu1 %v3984_v17  ;;  %3567 = vmatprep.subr.bf16.mxu0 %v3997_v31 }
 0x34b   :  { %3539 = vmatprep.subr.bf16.mxu1 %v3987_v20 }
 0x34d   :  { %3568 = vmatpush3.bf16.msra.mxu0 %v3998_v32 }
 0x34e   :  { %3540 = vmatpush3.bf16.msra.mxu1 %v3988_v22  ;;  %3569 = vmatprep.subr.bf16.mxu0 %v4001_v35  ;;  %v3402_v35 = vld [vmem:[%s4885_s7 + $0x4] sm:$0xf] }
 0x34f   :  { %3541 = vmatprep.subr.bf16.mxu1 %v3991_v24 }
 0x351   :  { %3570 = vmatpush3.bf16.msra.mxu0 %v4002_v36  ;;  %v4011_v36 = vld [vmem:[#allocation2 + $0x40] sm:$0xff]  }
 0x352   :  { %3542 = vmatpush3.bf16.msra.mxu1 %v3992_v26  ;;  %3571 = vmatprep.subr.bf16.mxu0 %v4005_v39  ;;  %v4017_v39 = vld [vmem:[#allocation2 + $0x58] sm:$0xff]  }
 0x353   :  { %3543 = vmatprep.subr.bf16.mxu1 %v3995_v28 }
 0x355   :  { %3572 = vmatpush3.bf16.msra.mxu0 %v4006_v40  ;;  %v4019_v40 = vld [vmem:[#allocation2 + $0x60] sm:$0xff]  }
 0x356   :  { %3544 = vmatpush3.bf16.msra.mxu1 %v3996_v30  ;;  %3717 = vmatprep.subr.bf16.mxu0 %v4096_v0 }
 0x357   :  { %3545 = vmatprep.subr.bf16.mxu1 %v3999_v33 }
 0x35a   :  { %3546 = vmatpush3.bf16.msra.mxu1 %v4000_v34  ;;  %v2270_v34 = vld [vmem:[%s4885_s7] sm:$0xf] }
 0x35b   :  { %3547 = vmatprep.subr.bf16.mxu1 %v4003_v37  ;;  %v4013_v37 = vld [vmem:[#allocation2 + $0x48] sm:$0xff]  }
 0x35e   :  { %3548 = vmatpush3.bf16.msra.mxu1 %v4004_v38  ;;  %v4015_v38 = vld [vmem:[#allocation2 + $0x50] sm:$0xff]  }
 0x35f   :  { %3549 = vmatprep.subr.bf16.mxu1 %v4007_v41  ;;  %v4021_v41 = vld [vmem:[#allocation2 + $0x68] sm:$0xff]  }
 0x362   :  { %3550 = vmatpush3.bf16.msra.mxu1 %v4008_v42  ;;  %v4022_v42 = vld [vmem:[#allocation2 + $0x38] sm:$0xff]  }
 0x363   :  { %3685 = vmatprep.subr.bf16.mxu1 %v4096_v0 }
 0x3e8   :  { %v3529_v43 = vpop.f32.mrb[12].mxu0 }
 0x3e9   :  { %v3530_v44 = vpop.f32.mrb[13].mxu0 }
 0x3ea   :  { %v3531_v45 = vadd.f32 %v3530_v44, %v3529_v43  ;;  %v3532_v46 = vpop.f32.mrb[14].mxu0  ;;  %v4023_v43 = vld [vmem:[#allocation2 + $0x70] sm:$0xff]   ;;  %v4024_v44 = vld [vmem:[#allocation2 + $0x78] sm:$0xff]  }
 0x3eb   :  { %v3533_v47 = vpop.f32.mrb[15].mxu0 }
 0x3f0   :  { %v3485_v48 = vpop.f32.mrb[32].mxu1  ;;  %v2079_v49 = vpop.f32.mrb[16].mxu0 }
 0x3f1   :  { %v3486_v50 = vpop.f32.mrb[33].mxu1  ;;  %v2086_v51 = vpack.c.bf16 %v2079_v49, %v2079_v49  ;;  %v2081_v52 = vpop.f32.mrb[17].mxu0 }
 0x3f2   :  { %v3487_v53 = vadd.f32 %v3486_v50, %v3485_v48  ;;  %v3488_v54 = vpop.f32.mrb[34].mxu1  ;;  %v2087_v55 = vpack.c.bf16 %v2081_v52, %v2081_v52  ;;  %v2083_v56 = vpop.f32.mrb[18].mxu0 }
 0x3f3   :  { %v3489_v57 = vpop.f32.mrb[35].mxu1  ;;  %v2084_v58 = vpop.f32.mrb[19].mxu0  ;;  %v4025_v56 = vld [vmem:[#allocation2 + $0x80] sm:$0xff]  }
 0x3f4   :  { %2249 = vmatprep.mubr.bf16.mxu0 %v2087_v55  ;;  %v3420_v55 = vld [vmem:[%s4885_s7 + $0x8] sm:$0xf]  ;;  %v4027_v58 = vld [vmem:[#allocation2 + $0x90] sm:$0xff]  }
 0x3f5   :  { %2250 = vmatmul.mubr.bf16.vlgmr.msra.gmra.mrb[20].mxu0 %v2086_v51  ;;  %v4026_v57 = vld [vmem:[#allocation2 + $0x88] sm:$0xff]  }
 0x3f6   :  { %3733 = vmatprep.mubr.msk.bf16.mxu0 %vm4097_vm0, %v4096_v0  ;;  %3718 = vmatpush3.bf16.msra.mxu0 %v4009_v11 }
 0x3f7   :  { %3719 = vmatprep.subr.bf16.mxu0 %v4096_v0 }
 0x3fa   :  { %3720 = vmatpush3.bf16.msra.mxu0 %v4010_v12 }
 0x3fb   :  { %3721 = vmatprep.subr.bf16.mxu0 %v4096_v0 }
 0x3fe   :  { %3722 = vmatpush3.bf16.msra.mxu0 %v4012_v13 }
 0x3ff   :  { %3723 = vmatprep.subr.bf16.mxu0 %v4096_v0 }
 0x402   :  { %3724 = vmatpush3.bf16.msra.mxu0 %v4014_v14 }
 0x403   :  { %3725 = vmatprep.subr.bf16.mxu0 %v4096_v0 }
 0x406   :  { %3726 = vmatpush3.bf16.msra.mxu0 %v4016_v62 }
 0x407   :  { %3727 = vmatprep.subr.bf16.mxu0 %v4096_v0 }
 0x40a   :  { %3728 = vmatpush3.bf16.msra.mxu0 %v4018_v19 }
 0x40b   :  { %3729 = vmatprep.subr.bf16.mxu0 %v4096_v0 }
 0x40e   :  { %3730 = vmatpush3.bf16.msra.mxu0 %v4020_v1 }
 0x40f   :  { %3731 = vmatprep.subr.bf16.mxu0 %v4096_v0 }
 0x410   :  { %v3507_v59 = vpop.f32.mrb[36].mxu1 }
 0x411   :  { %v3508_v60 = vpop.f32.mrb[37].mxu1 }
 0x412   :  { %v3509_v61 = vadd.f32 %v3508_v60, %v3507_v59  ;;  %v3510_v63 = vpop.f32.mrb[38].mxu1  ;;  %3732 = vmatpush3.bf16.msra.mxu0 %v4022_v42  ;;  %v4028_v59 = vld [vmem:[#allocation2 + $0x98] sm:$0xff]   ;;  %v4029_v60 = vld [vmem:[#allocation2 + $0xa0] sm:$0xff]  }
 0x413   :  { %v3511_v2 = vpop.f32.mrb[39].mxu1  ;;  %3763 = vmatprep.subr.bf16.mxu0 %v4096_v0  ;;  %v4031_v63 = vld [vmem:[#allocation2 + $0xb0] sm:$0xff]  }
 0x414   :  { %v1599_v3 = vadd.f32 %v3509_v61, %v3487_v53  ;;  %v4030_v61 = vld [vmem:[#allocation2 + $0xa8] sm:$0xff]   ;;  %v4032_v2 = vld [vmem:[#allocation2 + $0xb8] sm:$0xff]  }
 0x416   :  { %v1821_v4 = vadd.f32 %v3531_v45, %v1599_v3 }
 0x418   :  { %v1861_v5 = vpop.f32.mrb[40].mxu1 }
 0x419   :  { %v1863_v6 = vpop.f32.mrb[41].mxu1  ;;  %v1868_v9 = vpack.c.bf16 %v1861_v5, %v1861_v5 }
 0x41a   :  { %v1869_v7 = vpack.c.bf16 %v1863_v6, %v1863_v6  ;;  %v1865_v8 = vpop.f32.mrb[42].mxu1 }
 0x41b   :  { %v1866_v10 = vpop.f32.mrb[43].mxu1 }
 0x41c   :  { %2031 = vmatprep.mubr.bf16.mxu1 %v1869_v7 }
 0x41d   :  { %2032 = vmatmul.mubr.bf16.vlgmr.msra.gmra.mrb[44].mxu1 %v1868_v9 }
 0x41e   :  { %3687 = vmatprep.mubr.msk.bf16.mxu1 %vm4097_vm0, %v4096_v0 }
 0x4c8   :  { %v3573_v15 = vpop.f32.mrb[20].mxu0 }
 0x4c9   :  { %v3574_v16 = vpop.f32.mrb[21].mxu0 }
 0x4ca   :  { %v3575_v17 = vadd.f32 %v3574_v16, %v3573_v15  ;;  %v3576_v18 = vpop.f32.mrb[22].mxu0  ;;  %v3430_v15 = vld [vmem:[%s4887_s9] ss:$0 sm:$0xff] }
 0x4cb   :  { %v3577_v20 = vpop.f32.mrb[23].mxu0 }
 0x4f0   :  { %v3551_v21 = vpop.f32.mrb[44].mxu1 }
 0x4f1   :  { %v3552_v22 = vpop.f32.mrb[45].mxu1 }
 0x4f2   :  { %v3553_v23 = vadd.f32 %v3552_v22, %v3551_v21  ;;  %v3554_v24 = vpop.f32.mrb[46].mxu1 }
 0x4f3   :  { %v3555_v25 = vpop.f32.mrb[47].mxu1 }
 0x4f4   :  { %v2039_v26 = vadd.f32 %v3553_v23, %v1821_v4 }
 0x4f6   :  { %v2257_v28 = vadd.f32 %v3575_v17, %v2039_v26  ;;  %v2739_v26 = vld [vmem:[%s4888_s10] sm:$0x1] }
 0x4f8   :  { %v2265_v29 = vadd.f32 %v3400_v27, %v2257_v28  ;;  %v4033_v27 = vld [vmem:[%s4889_s11] sm:$0xff]   ;;  %v4034_v28 = vld [vmem:[%s4889_s11 + $0x8] sm:$0xff]  }
 0x4fa   :  { %vm2266_vm8 = vcmp.ge.f32.partialorder %v2265_v29, 0.0  ;;  %v2267_v30 = vmul.f32 0.1, %v2265_v29 }
 0x4fc   :  { %v2268_v31 = vsel %vm2266_vm8, %v2265_v29, %v2267_v30  ;;  %v4035_v29 = vld [vmem:[%s4889_s11 + $0x10] sm:$0xff]   ;;  %v4036_v30 = vld [vmem:[%s4889_s11 + $0x18] sm:$0xff]  }
 0x4fd   :  { %v2269_v32 = vpack.c.bf16 %v2268_v31, %v2268_v31  ;;  %v4037_v31 = vld [vmem:[%s4889_s11 + $0x20] sm:$0xff]  }
 0x4ff   :  { %v2277_v33 = vsel %vm2275_vm9, %v2269_v32, 0  ;;  %v4038_v32 = vld [vmem:[%s4889_s11 + $0x28] sm:$0xff]  }
 0x500   :  { %3686 = vmatpush3.bf16.msra.mxu1 %v2277_v33 }
 0x501   :  { %3691 = vmatprep.subr.bf16.mxu1 %v4096_v0 }
 0x503   :  { %3688 = vmatmul.mubr.msk.bf16.vlgmr.msra.gmra.mrb[48].mxu1 %vm2271_vm10, %v2270_v34  ;;  %v4040_v34 = vld [vmem:[%s4889_s11 + $0x38] sm:$0xff]  }
 0x504   :  { %3692 = vmatpush3.bf16.msra.mxu1 %v2277_v33  ;;  %3693 = vmatprep.mubr.msk.bf16.mxu1 %vm4097_vm0, %v4096_v0 }
 0x505   :  { %3697 = vmatprep.subr.bf16.mxu1 %v4096_v0 }
 0x50b   :  { %3694 = vmatmul.mubr.msk.bf16.vlgmr.msra.gmra.mrb[52].mxu1 %vm2271_vm10, %v3402_v35  ;;  %v4041_v35 = vld [vmem:[%s4890_s12] sm:$0xff]  }
 0x50c   :  { %3698 = vmatpush3.bf16.msra.mxu1 %v4011_v36  ;;  %3713 = vmatprep.mubr.msk.bf16.mxu1 %vm4097_vm0, %v4096_v0 }
 0x50d   :  { %3699 = vmatprep.subr.bf16.mxu1 %v4096_v0 }
 0x510   :  { %3700 = vmatpush3.bf16.msra.mxu1 %v4013_v37 }
 0x511   :  { %3701 = vmatprep.subr.bf16.mxu1 %v4096_v0 }
 0x514   :  { %3702 = vmatpush3.bf16.msra.mxu1 %v4015_v38 }
 0x515   :  { %3703 = vmatprep.subr.bf16.mxu1 %v4096_v0 }
 0x518   :  { %3704 = vmatpush3.bf16.msra.mxu1 %v4017_v39 }
 0x519   :  { %3705 = vmatprep.subr.bf16.mxu1 %v4096_v0 }
 0x51c   :  { %3706 = vmatpush3.bf16.msra.mxu1 %v4019_v40 }
 0x51d   :  { %3707 = vmatprep.subr.bf16.mxu1 %v4096_v0 }
 0x520   :  { %3708 = vmatpush3.bf16.msra.mxu1 %v4021_v41  ;;  %v4042_v41 = vld [vmem:[%s4890_s12 + $0x8] sm:$0xff]  }
 0x521   :  { %3709 = vmatprep.subr.bf16.mxu1 %v4096_v0 }
 0x524   :  { %3710 = vmatpush3.bf16.msra.mxu1 %v4023_v43 }
 0x525   :  { %3711 = vmatprep.subr.bf16.mxu1 %v4096_v0 }
 0x528   :  { %3712 = vmatpush3.bf16.msra.mxu1 %v4024_v44 }
 0x529   :  { %3737 = vmatprep.subr.bf16.mxu1 %v4096_v0 }
 0x5d6   :  { %v2313_v45 = vpop.f32.mrb[48].mxu1 }
 0x5d7   :  { %v2319_v46 = vpack.c.bf16 %v2313_v45, %v2313_v45  ;;  %v3689_v47 = vpop.f32.mrb[49].mxu1 }
 0x5d8   :  { %v2316_v48 = vpop.f32.mrb[50].mxu1  ;;  %v4043_v47 = vld [vmem:[%s4892_s14] sm:$0xff]  }
 0x5d9   :  { %v3690_v49 = vpop.f32.mrb[51].mxu1  ;;  %3734 = vmatmul.mubr.bf16.vlgmr.msra.gmra.mrb[24].mxu0 %v2319_v46  ;;  %v4044_v48 = vld [vmem:[%s4892_s14 + $0x8] sm:$0xff]   ;;  %s4099_s14 = smov [#allocation5]  }
 0x5da   :  { %3765 = vmatprep.mubr.msk.bf16.mxu0 %vm4097_vm0, %v4096_v0  ;;  %v3440_v49 = vld [vmem:[%s4891_s13] ss:$0 sm:$0xff]  ;;  %s3035_s23 = sshll.u32 %s4099_s14, 4  ;;  %s3036_s23 = int_to_ptr.vmem [resolvable:$true] %s3035_s23 }
 0x5db   :  { %s4067_s13 = scalar_lea.vmem %s3036_s23, 32  ;;  %p4072_p9 = scmp.lt.s32.totalorder %s3036_s23, %s3036_s23 }
 0x5dc   :  { %p4068_p8 = scmp.ne.s32.totalorder %s3036_s23, %s4067_s13  ;;  %p4073_p10 = scmp.lt.s32.totalorder %s4067_s13, %s4067_s13 }
 0x5de   :  { %v2375_v50 = vpop.f32.mrb[52].mxu1  ;;  %p4074_p11 = por %p4073_p10, %p4072_p9 }
 0x5df   :  { %v2381_v51 = vpack.c.bf16 %v2375_v50, %v2375_v50  ;;  %v3695_v52 = vpop.f32.mrb[53].mxu1 }
 0x5e0   :  { %v2378_v53 = vpop.f32.mrb[54].mxu1  ;;  %p4075_p12 = pnand %p4074_p11, %p4068_p8 }
 0x5e1   :  { %v3696_v54 = vpop.f32.mrb[55].mxu1  ;;  %3714 = vmatmul.mubr.bf16.vlgmr.msra.gmra.mrb[56].mxu1 %v2381_v51 }
 0x5e2   :  { %3738 = vmatpush3.bf16.msra.mxu1 %v2277_v33  ;;  %3739 = vmatprep.mubr.msk.bf16.mxu1 %vm4097_vm0, %v4096_v0  ;;  %v4039_v33 = vld [vmem:[%s4889_s11 + $0x30] sm:$0xff]  }
 0x5e3   :  { %3743 = vmatprep.subr.bf16.mxu1 %v4096_v0 }
 0x5e9   :  { %3740 = vmatmul.mubr.msk.bf16.vlgmr.msra.gmra.mrb[60].mxu1 %vm2271_vm10, %v3420_v55 }
 0x5ea   :  { %3744 = vmatpush3.bf16.msra.mxu1 %v4025_v56  ;;  %3759 = vmatprep.mubr.msk.bf16.mxu1 %vm4097_vm0, %v4096_v0 }
 0x5eb   :  { %3745 = vmatprep.subr.bf16.mxu1 %v4096_v0 }
 0x5ee   :  { %3746 = vmatpush3.bf16.msra.mxu1 %v4026_v57 }
 0x5ef   :  { %3747 = vmatprep.subr.bf16.mxu1 %v4096_v0 }
 0x5f2   :  { %3748 = vmatpush3.bf16.msra.mxu1 %v4027_v58 }
 0x5f3   :  { %3749 = vmatprep.subr.bf16.mxu1 %v4096_v0 }
 0x5f6   :  { %3750 = vmatpush3.bf16.msra.mxu1 %v4028_v59 }
 0x5f7   :  { %3751 = vmatprep.subr.bf16.mxu1 %v4096_v0 }
 0x5fa   :  { %3752 = vmatpush3.bf16.msra.mxu1 %v4029_v60 }
 0x5fb   :  { %3753 = vmatprep.subr.bf16.mxu1 %v4096_v0 }
 0x5fe   :  { %3754 = vmatpush3.bf16.msra.mxu1 %v4030_v61 }
 0x5ff   :  { %3755 = vmatprep.subr.bf16.mxu1 %v4096_v0 }
 0x602   :  { %3756 = vmatpush3.bf16.msra.mxu1 %v4031_v63 }
 0x603   :  { %3757 = vmatprep.subr.bf16.mxu1 %v4096_v0 }
 0x606   :  { %3758 = vmatpush3.bf16.msra.mxu1 %v4032_v2 }
 0x607   :  { %3789 = vmatprep.subr.bf16.mxu1 %v4096_v0 }
 0x6ac   :  { %v2569_v3 = vpop.f32.mrb[24].mxu0 }
 0x6ad   :  { %v3735_v4 = vpop.f32.mrb[25].mxu0 }
 0x6ae   :  { %v2572_v5 = vpop.f32.mrb[26].mxu0 }
 0x6af   :  { %v3736_v6 = vpop.f32.mrb[27].mxu0 }
 0x6b4   :  { %v2481_v7 = vpop.f32.mrb[56].mxu1 }
 0x6b5   :  { %v2570_v8 = vadd.f32 %v2569_v3, %v2481_v7  ;;  %v3715_v9 = vpop.f32.mrb[57].mxu1 }
 0x6b6   :  { %v2484_v10 = vpop.f32.mrb[58].mxu1 }
 0x6b7   :  { %v3716_v11 = vpop.f32.mrb[59].mxu1 }
 0x6bc   :  { %v2614_v12 = vpop.f32.mrb[60].mxu1 }
 0x6bd   :  { %v2620_v13 = vpack.c.bf16 %v2614_v12, %v2614_v12  ;;  %v3741_v14 = vpop.f32.mrb[61].mxu1 }
 0x6be   :  { %v2617_v62 = vpop.f32.mrb[62].mxu1 }
 0x6bf   :  { %v3742_v19 = vpop.f32.mrb[63].mxu1  ;;  %3760 = vmatmul.mubr.bf16.vlgmr.msra.gmra.mrb[64].mxu1 %v2620_v13 }
 0x6c0   :  { %3793 = vmatprep.mubr.msk.bf16.mxu1 %vm4097_vm0, %v4096_v0  ;;  %3790 = vmatpush3.bf16.msra.mxu1 %v4041_v35 }
 0x6c1   :  { %3791 = vmatprep.subr.bf16.mxu1 %v4096_v0 }
 0x6c4   :  { %3792 = vmatpush3.bf16.msra.mxu1 %v4042_v41 }
 0x6c5   :  { %3797 = vmatprep.subr.bf16.mxu1 %v4096_v0 }
 0x792   :  { %v2720_v1 = vpop.f32.mrb[64].mxu1 }
 0x793   :  { %v2726_v16 = vadd.f32 %v2720_v1, %v2570_v8  ;;  %v3761_v17 = vpop.f32.mrb[65].mxu1 }
 0x794   :  { %v2723_v18 = vpop.f32.mrb[66].mxu1 }
 0x795   :  { %v2734_v20 = vadd.f32 %v3430_v15, %v2726_v16  ;;  %v3762_v21 = vpop.f32.mrb[67].mxu1 }
 0x797   :  { %vm2735_vm11 = vcmp.ge.f32.partialorder %v2734_v20, 0.0  ;;  %v2736_v22 = vmul.f32 0.1, %v2734_v20 }
 0x799   :  { %v2737_v23 = vsel %vm2735_vm11, %v2734_v20, %v2736_v22 }
 0x79a   :  { %v2738_v24 = vpack.c.bf16 %v2737_v23, %v2737_v23 }
 0x79c   :  { %v2744_v25 = vsel %vm2275_vm9, %v2738_v24, 0 }
 0x79d   :  { %3764 = vmatpush3.bf16.msra.mxu0 %v2744_v25 }
 0x79e   :  { %3769 = vmatprep.subr.bf16.mxu0 %v4096_v0 }
 0x7a0   :  { %3766 = vmatmul.mubr.msk.bf16.vlgmr.msra.gmra.mrb[28].mxu0 %vm2271_vm10, %v2739_v26 }
 0x7a1   :  { %3770 = vmatpush3.bf16.msra.mxu0 %v4033_v27  ;;  %3785 = vmatprep.mubr.msk.bf16.mxu0 %vm4097_vm0, %v4096_v0 }
 0x7a2   :  { %3771 = vmatprep.subr.bf16.mxu0 %v4096_v0 }
 0x7a5   :  { %3772 = vmatpush3.bf16.msra.mxu0 %v4034_v28 }
 0x7a6   :  { %3773 = vmatprep.subr.bf16.mxu0 %v4096_v0 }
 0x7a9   :  { %3774 = vmatpush3.bf16.msra.mxu0 %v4035_v29 }
 0x7aa   :  { %3775 = vmatprep.subr.bf16.mxu0 %v4096_v0 }
 0x7ad   :  { %3776 = vmatpush3.bf16.msra.mxu0 %v4036_v30 }
 0x7ae   :  { %3777 = vmatprep.subr.bf16.mxu0 %v4096_v0 }
 0x7b1   :  { %3778 = vmatpush3.bf16.msra.mxu0 %v4037_v31 }
 0x7b2   :  { %3779 = vmatprep.subr.bf16.mxu0 %v4096_v0 }
 0x7b5   :  { %3780 = vmatpush3.bf16.msra.mxu0 %v4038_v32 }
 0x7b6   :  { %3781 = vmatprep.subr.bf16.mxu0 %v4096_v0 }
 0x7b9   :  { %3782 = vmatpush3.bf16.msra.mxu0 %v4039_v33 }
 0x7ba   :  { %3783 = vmatprep.subr.bf16.mxu0 %v4096_v0 }
 0x7bd   :  { %3784 = vmatpush3.bf16.msra.mxu0 %v4040_v34 }
 0x873   :  { %v2780_v36 = vpop.f32.mrb[28].mxu0 }
 0x874   :  { %v2786_v37 = vpack.c.bf16 %v2780_v36, %v2780_v36  ;;  %v3767_v38 = vpop.f32.mrb[29].mxu0 }
 0x875   :  { %v2783_v39 = vpop.f32.mrb[30].mxu0 }
 0x876   :  { %3786 = vmatmul.mubr.bf16.vlgmr.msra.gmra.mrb[32].mxu0 %v2786_v37  ;;  %v3768_v40 = vpop.f32.mrb[31].mxu0 }
 0x949   :  { %v2885_v42 = vpop.f32.mrb[32].mxu0 }
 0x94a   :  { %v2891_v43 = vpack.c.bf16 %v2885_v42, %v2885_v42  ;;  %v3787_v44 = vpop.f32.mrb[33].mxu0 }
 0x94b   :  { %v2888_v45 = vpop.f32.mrb[34].mxu0 }
 0x94c   :  { %3794 = vmatmul.mubr.msk.bf16.vlgmr.msra.gmra.mrb[68].mxu1 %vm92_vm1, %v2891_v43  ;;  %v3788_v46 = vpop.f32.mrb[35].mxu0 }
 0x94d   :  { %3801 = vmatprep.mubr.msk.bf16.mxu1 %vm4097_vm0, %v4096_v0  ;;  %3798 = vmatpush3.bf16.msra.mxu1 %v4043_v47 }
 0x94e   :  { %3799 = vmatprep.subr.bf16.mxu1 %v4096_v0  ;;  %v3444_v0 = vld [vmem:[%s4893_s15] ss:$0 sm:$0xff] }
 0x951   :  { %3800 = vmatpush3.bf16.msra.mxu1 %v4044_v48 }
 0xa1f   :  { %v2952_v50 = vpop.f32.mrb[68].mxu1 }
 0xa20   :  { %v2953_v51 = vadd.f32 %v3440_v49, %v2952_v50  ;;  %v3795_v52 = vpop.f32.mrb[69].mxu1 }
 0xa21   :  { %v2955_v53 = vpop.f32.mrb[70].mxu1 }
 0xa22   :  { %vm2958_vm12 = vcmp.ge.f32.partialorder %v2953_v51, 0.0  ;;  %v2959_v54 = vmul.f32 0.1, %v2953_v51  ;;  %v3796_v55 = vpop.f32.mrb[71].mxu1 }
 0xa24   :  { %v2960_v56 = vsel %vm2958_vm12, %v2953_v51, %v2959_v54 }
 0xa25   :  { %v2961_v57 = vpack.c.bf16 %v2960_v56, %v2960_v56 }
 0xa27   :  { %3802 = vmatmul.mubr.msk.bf16.vlgmr.msra.gmra.mrb[72].mxu1 %vm92_vm1, %v2961_v57 }
 0xafa   :  { %v3022_v58 = vpop.f32.mrb[72].mxu1 }
 0xafb   :  { %v3023_v59 = vadd.f32 %v3444_v0, %v3022_v58  ;;  %v3803_v60 = vpop.f32.mrb[73].mxu1 }
 0xafc   :  { %v3025_v61 = vpop.f32.mrb[74].mxu1 }
 0xafd   :  { %3028 = vst [vmem:[#allocation5] sm:$0x3] %v3023_v59  ;;  %v3804_v63 = vpop.f32.mrb[75].mxu1 }
 0xafe   :  { %4078 = shalt.err (!%p4075_p12)
}
 0xaff   :  { %s4079_s15 = scalar_lea.hbm %s4894_s16, 32 }
 0xb00   :  { %p4080_p13 = scmp.ne.s32.totalorder %s4894_s16, %s4079_s15  ;;  %p4083_p0 = scmp.lt.u32.totalorder %s4079_s15, %s4894_s16 }
 0xb02   :  { %p4085_p1 = pnand %p4083_p0, %p4080_p13 }
 0xb04   :  { %4088 = shalt.err (!%p4085_p1)
}
 0xb05   :  { %3038 = dma.vmem_to_hbm [thread:$0]  %s3036_s23, 32, %s4894_s16, [#allocation4]  }
 0xb06   :  { %4091 = dma.done.wait [#allocation4], 32  }
 0xb07   :  { %4092 = vsyncadd [#allocation4], 4294967264 }
 0xb08   :  { %3042 = vsyncpa [#allocation3], 1 }
 0xb09   :  { %3043 = vsyncpa [#allocation4], 1 }

</bundles_post_ra>
